<compile_context>
chip_gen: v7x
topology: tpu7x:2x2x1
jax: 0.10.0
libtpu: 0.0.40
codegen_flags: <defaults>
</compile_context>

<pallas_src>
import functools

import jax
import jax.numpy as jnp
from jax import lax
from jax.experimental import pallas as pl
from jax.experimental.pallas import tpu as pltpu

# ---- small, deterministic config (mirrors const.Config fields) -------------
VOCAB_SIZE = 50
EMBED = 32                 # embedding_size
FILTER_SIZES = (2, 3, 4)
FILTER_NUM = 8
SEQ_LEN = 16
BATCH = 4
NUM_CLASSES = 2
LANE = 128
FEAT_DIM = len(FILTER_SIZES) * FILTER_NUM            # 24


def textcnn_kernel(tok_ref, table_ref, fcw_ref, fcb_ref, out_ref, *,
                   batch, seq_len, filter_sizes, num_classes):
    """Whole-batch fused TextCNN forward.

    tok_ref   : (B*L, 1) int32      raw token ids
    table_ref : (Vp, nblk*128) f32  pre-convolved table (emb @ conv_w + bias)
    fcw_ref   : (8, 128) f32        row (filter_blk*NC + class) = fc weights
    fcb_ref   : (1, NC) f32         fc bias
    out_ref   : (B, NC) f32         logits
    """
    n_rows = batch * seq_len
    vpad = table_ref.shape[0]

    # --- embedding + every (filter size, shift) conv in ONE MXU pass --------
    lane_id = lax.broadcasted_iota(jnp.int32, (n_rows, vpad), 1)
    one_hot = (lane_id == tok_ref[...]).astype(jnp.float32)       # (B*L, Vp)
    y = jnp.dot(one_hot, table_ref[...],
                preferred_element_type=jnp.float32)                # (B*L, nblk*128)

    # --- shift-add via flat sublane rolls, ReLU, masked time max-pool -------
    t_id = lax.broadcasted_iota(jnp.int32, (batch, seq_len, LANE), 1)
    pooled = []
    blk = 0
    for k in filter_sizes:
        acc = y[:, blk * LANE:(blk + 1) * LANE]                    # aligned view
        for j in range(1, k):
            sh = y[:, (blk + j) * LANE:(blk + j + 1) * LANE]
            # rolled[r] = sh[r + j]; wrapped rows fall on t > L-k (masked below)
            acc = acc + pltpu.roll(sh, shift=n_rows - j, axis=0)
        acc = jnp.maximum(acc, 0.0)                                # ReLU (VPU)
        acc = acc.reshape(batch, seq_len, LANE)
        acc = jnp.where(t_id <= seq_len - k, acc, 0.0)             # mask invalid t
        pooled.append(jnp.max(acc, axis=1))                        # (B, 128)
        blk += k

    # --- final FC on VPU (+ one lane reduce per class), no tiny MXU dot -----
    # TODO(synk): dropout is identity in eval mode; training-mode dropout not implemented.
    class_id = lax.broadcasted_iota(jnp.int32, (batch, num_classes), 1)
    logits = fcb_ref[...]                                          # (1, NC)
    for c in range(num_classes):
        prod = pooled[0] * fcw_ref[pl.ds(0 * num_classes + c, 1), :]
        for bi in range(1, len(filter_sizes)):
            prod = prod + pooled[bi] * fcw_ref[pl.ds(bi * num_classes + c, 1), :]
        col = jnp.sum(prod, axis=1, keepdims=True)                 # (B, 1)
        logits = logits + jnp.where(class_id == c, col, 0.0)
    out_ref[...] = logits                                          # single store


def pack_params(emb_table, conv_ws, conv_bs, fc_w, fc_b):
    """One-time weight preprocessing (done outside the hot forward path)."""
    vocab, _ = emb_table.shape
    f = FILTER_NUM
    # Pack every (filter size k, shift j) weight into a 128-lane column block;
    # fold each conv bias into that filter's j==0 block.
    w_blocks, b_blocks = [], []
    for w, b in zip(conv_ws, conv_bs):          # w: (k, E, F), b: (1, F)
        k = w.shape[0]
        for j in range(k):
            w_blocks.append(jnp.pad(w[j], ((0, 0), (0, LANE - f))))
            bj = b if j == 0 else jnp.zeros_like(b)
            b_blocks.append(jnp.pad(bj, ((0, 0), (0, LANE - f))))
    w_all = jnp.concatenate(w_blocks, axis=1)                      # (E, nblk*128)
    b_all = jnp.concatenate(b_blocks, axis=1)                      # (1, nblk*128)

    # Pre-convolved table: table[v] = emb[v] @ w_all + b_all.
    table = emb_table @ w_all + b_all                              # (V, nblk*128)
    vpad = pl.cdiv(vocab, LANE) * LANE
    table = jnp.pad(table, ((0, vpad - vocab), (0, 0)))            # (Vp, nblk*128)

    # FC weights: row (filter_blk*NC + class) holds fc_w rows for that filter
    # block in lanes 0..F-1; padded to 8 rows x 128 lanes.
    rows = []
    for bi in range(len(FILTER_SIZES)):
        for c in range(NUM_CLASSES):
            rows.append(jnp.pad(fc_w[bi * f:(bi + 1) * f, c], (0, LANE - f)))
    fcw_pad = jnp.stack(rows, axis=0)
    fcw_pad = jnp.pad(fcw_pad, ((0, (-fcw_pad.shape[0]) % 8), (0, 0)))
    return table, fcw_pad, fc_b


@jax.jit
def textcnn_forward(tokens, table, fcw, fcb):
    """tokens: (B, L) int32.  Returns logits (B, NC) float32."""
    batch, seq_len = tokens.shape
    assert seq_len >= max(FILTER_SIZES), "seq_len must cover the largest filter"
    kernel = functools.partial(textcnn_kernel,
                               batch=batch, seq_len=seq_len,
                               filter_sizes=FILTER_SIZES,
                               num_classes=NUM_CLASSES)
    vmem = pl.BlockSpec(memory_space=pltpu.MemorySpace.VMEM)
    return pl.pallas_call(
        kernel,
        out_shape=jax.ShapeDtypeStruct((batch, NUM_CLASSES), jnp.float32),
        in_specs=[vmem] * 4,
        out_specs=vmem,
    )(tokens.reshape(-1, 1), table, fcw, fcb)


def reference_forward(tokens, emb_table, conv_ws, conv_bs, fc_w, fc_b):
    """Pure-JAX reference matching the PyTorch forward (eval mode)."""
    batch, seq_len = tokens.shape
    x = jnp.take(emb_table, tokens, axis=0)          # (B, L, E)
    feats = []
    for (w, bias), k in zip(zip(conv_ws, conv_bs), FILTER_SIZES):
        l_out = seq_len - k + 1
        acc = jnp.zeros((batch, l_out, FILTER_NUM), jnp.float32)
        for j in range(k):
            acc = acc + jnp.einsum('ble,ef->blf', x[:, j:j + l_out, :], w[j])
        acc = jnp.maximum(acc + bias[0], 0.0)
        feats.append(jnp.max(acc, axis=1))           # (B, F)
    feat = jnp.concatenate(feats, axis=1)            # (B, 3F)
    return feat @ fc_w + fc_b[0]


if __name__ == "__main__":
    key = jax.random.PRNGKey(0)
    k_tok, k_emb, k_fc_w, k_fc_b, *k_convs = jax.random.split(
        key, 4 + 2 * len(FILTER_SIZES))

    tokens = jax.random.randint(k_tok, (BATCH, SEQ_LEN), 0, VOCAB_SIZE,
                                dtype=jnp.int32)
    # Deterministic synthetic "pretrained" embedding (normal(0, 0.9) in torch code).
    emb_table = 0.9 * jax.random.normal(k_emb, (VOCAB_SIZE, EMBED),
                                        dtype=jnp.float32)

    conv_ws, conv_bs = [], []
    for i, k in enumerate(FILTER_SIZES):
        kw, kb = k_convs[2 * i], k_convs[2 * i + 1]
        conv_ws.append(0.1 * jax.random.normal(kw, (k, EMBED, FILTER_NUM),
                                               dtype=jnp.float32))
        conv_bs.append(0.1 * jax.random.normal(kb, (1, FILTER_NUM),
                                               dtype=jnp.float32))
    fc_w = 0.1 * jax.random.normal(k_fc_w, (FEAT_DIM, NUM_CLASSES),
                                   dtype=jnp.float32)
    fc_b = 0.1 * jax.random.normal(k_fc_b, (1, NUM_CLASSES), dtype=jnp.float32)

    # One-time weight preprocessing (pre-convolved embedding table etc.).
    table, fcw_pad, fcb = pack_params(emb_table, conv_ws, conv_bs, fc_w, fc_b)

    logits = textcnn_forward(tokens, table, fcw_pad, fcb)
    logits = jax.block_until_ready(logits)

    ref = reference_forward(tokens, emb_table, conv_ws, conv_bs, fc_w, fc_b)
    assert logits.shape == (BATCH, NUM_CLASSES)
    assert jnp.allclose(logits, ref, atol=1e-3, rtol=1e-3), (logits, ref)

    print("KERNEL_OK")
</pallas_src>

<mosaic_0001>
module attributes {stable_mosaic.version = 11 : i64} {
  func.func @textcnn_kernel(%arg0: memref<64x1xi32, #tpu.memory_space<vmem>>, %arg1: memref<128x1152xf32, #tpu.memory_space<vmem>>, %arg2: memref<8x128xf32, #tpu.memory_space<vmem>>, %arg3: memref<1x2xf32, #tpu.memory_space<vmem>>, %arg4: memref<4x2xf32, #tpu.memory_space<vmem>>) attributes {dimension_semantics = [], scalar_prefetch = 0 : i64, scratch_operands = 0 : i64, tpu.core_type = #tpu.core_type<tc>} {
    %0 = tpu.iota {dimensions = array<i32: 1>} : vector<64x128xi32>
    %c0 = arith.constant 0 : index
    %c0_0 = arith.constant 0 : index
    %1 = vector.load %arg0[%c0, %c0_0] : memref<64x1xi32, #tpu.memory_space<vmem>>, vector<64x1xi32>
    %2 = vector.broadcast %1 : vector<64x1xi32> to vector<64x128xi32>
    %3 = arith.cmpi eq, %0, %2 : vector<64x128xi32>
    %4 = arith.extui %3 : vector<64x128xi1> to vector<64x128xi32>
    %5 = arith.sitofp %4 : vector<64x128xi32> to vector<64x128xf32>
    %c0_1 = arith.constant 0 : index
    %c0_2 = arith.constant 0 : index
    %6 = vector.load %arg1[%c0_1, %c0_2] : memref<128x1152xf32, #tpu.memory_space<vmem>>, vector<128x1152xf32>
    %cst = arith.constant dense<0.000000e+00> : vector<64x1152xf32>
    %7 = tpu.matmul %5, %6, %cst {dimension_numbers = #tpu.dot_dimension_numbers<[1], [0], [0], [1], [0, 0, 1, 1], [], []>} : vector<64x128xf32>, vector<128x1152xf32>, vector<64x1152xf32> -> vector<64x1152xf32>
    %8 = tpu.iota {dimensions = array<i32: 1>} : vector<4x16x128xi32>
    %9 = vector.extract_strided_slice %7 {offsets = [0, 0], sizes = [64, 128], strides = [1, 1]} : vector<64x1152xf32> to vector<64x128xf32>
    %10 = vector.extract_strided_slice %7 {offsets = [0, 128], sizes = [64, 128], strides = [1, 1]} : vector<64x1152xf32> to vector<64x128xf32>
    %c63_i32 = arith.constant 63 : i32
    %11 = tpu.dynamic_rotate %10 by %c63_i32 dim 0 : vector<64x128xf32>, i32 -> vector<64x128xf32>
    %12 = arith.addf %9, %11 : vector<64x128xf32>
    %cst_3 = arith.constant 0.000000e+00 : f32
    %13 = vector.broadcast %cst_3 : f32 to vector<64x128xf32>
    %14 = arith.maximumf %12, %13 : vector<64x128xf32>
    %15 = vector.shape_cast %14 : vector<64x128xf32> to vector<4x16x128xf32>
    %c14_i32 = arith.constant 14 : i32
    %16 = vector.broadcast %c14_i32 : i32 to vector<4x16x128xi32>
    %17 = arith.cmpi sle, %8, %16 : vector<4x16x128xi32>
    %cst_4 = arith.constant 0.000000e+00 : f32
    %18 = vector.broadcast %cst_4 : f32 to vector<4x16x128xf32>
    %19 = arith.select %17, %15, %18 : vector<4x16x128xi1>, vector<4x16x128xf32>
    %cst_5 = arith.constant dense<0xFF800000> : vector<4x128xf32>
    %20 = vector.multi_reduction <maximumf>, %19, %cst_5 [1] : vector<4x16x128xf32> to vector<4x128xf32>
    %21 = vector.extract_strided_slice %7 {offsets = [0, 256], sizes = [64, 128], strides = [1, 1]} : vector<64x1152xf32> to vector<64x128xf32>
    %22 = vector.extract_strided_slice %7 {offsets = [0, 384], sizes = [64, 128], strides = [1, 1]} : vector<64x1152xf32> to vector<64x128xf32>
    %c63_i32_6 = arith.constant 63 : i32
    %23 = tpu.dynamic_rotate %22 by %c63_i32_6 dim 0 : vector<64x128xf32>, i32 -> vector<64x128xf32>
    %24 = arith.addf %21, %23 : vector<64x128xf32>
    %25 = vector.extract_strided_slice %7 {offsets = [0, 512], sizes = [64, 128], strides = [1, 1]} : vector<64x1152xf32> to vector<64x128xf32>
    %c62_i32 = arith.constant 62 : i32
    %26 = tpu.dynamic_rotate %25 by %c62_i32 dim 0 : vector<64x128xf32>, i32 -> vector<64x128xf32>
    %27 = arith.addf %24, %26 : vector<64x128xf32>
    %cst_7 = arith.constant 0.000000e+00 : f32
    %28 = vector.broadcast %cst_7 : f32 to vector<64x128xf32>
    %29 = arith.maximumf %27, %28 : vector<64x128xf32>
    %30 = vector.shape_cast %29 : vector<64x128xf32> to vector<4x16x128xf32>
    %c13_i32 = arith.constant 13 : i32
    %31 = vector.broadcast %c13_i32 : i32 to vector<4x16x128xi32>
    %32 = arith.cmpi sle, %8, %31 : vector<4x16x128xi32>
    %cst_8 = arith.constant 0.000000e+00 : f32
    %33 = vector.broadcast %cst_8 : f32 to vector<4x16x128xf32>
    %34 = arith.select %32, %30, %33 : vector<4x16x128xi1>, vector<4x16x128xf32>
    %cst_9 = arith.constant dense<0xFF800000> : vector<4x128xf32>
    %35 = vector.multi_reduction <maximumf>, %34, %cst_9 [1] : vector<4x16x128xf32> to vector<4x128xf32>
    %36 = vector.extract_strided_slice %7 {offsets = [0, 640], sizes = [64, 128], strides = [1, 1]} : vector<64x1152xf32> to vector<64x128xf32>
    %37 = vector.extract_strided_slice %7 {offsets = [0, 768], sizes = [64, 128], strides = [1, 1]} : vector<64x1152xf32> to vector<64x128xf32>
    %c63_i32_10 = arith.constant 63 : i32
    %38 = tpu.dynamic_rotate %37 by %c63_i32_10 dim 0 : vector<64x128xf32>, i32 -> vector<64x128xf32>
    %39 = arith.addf %36, %38 : vector<64x128xf32>
    %40 = vector.extract_strided_slice %7 {offsets = [0, 896], sizes = [64, 128], strides = [1, 1]} : vector<64x1152xf32> to vector<64x128xf32>
    %c62_i32_11 = arith.constant 62 : i32
    %41 = tpu.dynamic_rotate %40 by %c62_i32_11 dim 0 : vector<64x128xf32>, i32 -> vector<64x128xf32>
    %42 = arith.addf %39, %41 : vector<64x128xf32>
    %43 = vector.extract_strided_slice %7 {offsets = [0, 1024], sizes = [64, 128], strides = [1, 1]} : vector<64x1152xf32> to vector<64x128xf32>
    %c61_i32 = arith.constant 61 : i32
    %44 = tpu.dynamic_rotate %43 by %c61_i32 dim 0 : vector<64x128xf32>, i32 -> vector<64x128xf32>
    %45 = arith.addf %42, %44 : vector<64x128xf32>
    %cst_12 = arith.constant 0.000000e+00 : f32
    %46 = vector.broadcast %cst_12 : f32 to vector<64x128xf32>
    %47 = arith.maximumf %45, %46 : vector<64x128xf32>
    %48 = vector.shape_cast %47 : vector<64x128xf32> to vector<4x16x128xf32>
    %c12_i32 = arith.constant 12 : i32
    %49 = vector.broadcast %c12_i32 : i32 to vector<4x16x128xi32>
    %50 = arith.cmpi sle, %8, %49 : vector<4x16x128xi32>
    %cst_13 = arith.constant 0.000000e+00 : f32
    %51 = vector.broadcast %cst_13 : f32 to vector<4x16x128xf32>
    %52 = arith.select %50, %48, %51 : vector<4x16x128xi1>, vector<4x16x128xf32>
    %cst_14 = arith.constant dense<0xFF800000> : vector<4x128xf32>
    %53 = vector.multi_reduction <maximumf>, %52, %cst_14 [1] : vector<4x16x128xf32> to vector<4x128xf32>
    %54 = tpu.iota {dimensions = array<i32: 1>} : vector<4x2xi32>
    %c0_15 = arith.constant 0 : index
    %c0_16 = arith.constant 0 : index
    %55 = vector.load %arg3[%c0_15, %c0_16] : memref<1x2xf32, #tpu.memory_space<vmem>>, vector<1x2xf32>
    %c0_17 = arith.constant 0 : index
    %c0_18 = arith.constant 0 : index
    %56 = vector.load %arg2[%c0_17, %c0_18] : memref<8x128xf32, #tpu.memory_space<vmem>>, vector<1x128xf32>
    %57 = vector.broadcast %56 : vector<1x128xf32> to vector<4x128xf32>
    %58 = arith.mulf %20, %57 : vector<4x128xf32>
    %c2 = arith.constant 2 : index
    %c0_19 = arith.constant 0 : index
    %59 = vector.load %arg2[%c2, %c0_19] : memref<8x128xf32, #tpu.memory_space<vmem>>, vector<1x128xf32>
    %60 = vector.broadcast %59 : vector<1x128xf32> to vector<4x128xf32>
    %61 = arith.mulf %35, %60 : vector<4x128xf32>
    %62 = arith.addf %58, %61 : vector<4x128xf32>
    %c4 = arith.constant 4 : index
    %c0_20 = arith.constant 0 : index
    %63 = vector.load %arg2[%c4, %c0_20] : memref<8x128xf32, #tpu.memory_space<vmem>>, vector<1x128xf32>
    %64 = vector.broadcast %63 : vector<1x128xf32> to vector<4x128xf32>
    %65 = arith.mulf %53, %64 : vector<4x128xf32>
    %66 = arith.addf %62, %65 : vector<4x128xf32>
    %cst_21 = arith.constant dense<0.000000e+00> : vector<4xf32>
    %67 = vector.multi_reduction <add>, %66, %cst_21 [1] : vector<4x128xf32> to vector<4xf32>
    %68 = vector.shape_cast %67 : vector<4xf32> to vector<4x1xf32>
    %c0_i32 = arith.constant 0 : i32
    %69 = vector.broadcast %c0_i32 : i32 to vector<4x2xi32>
    %70 = arith.cmpi eq, %54, %69 : vector<4x2xi32>
    %cst_22 = arith.constant 0.000000e+00 : f32
    %71 = vector.shape_cast %68 : vector<4x1xf32> to vector<4x1xf32>
    %72 = vector.broadcast %71 : vector<4x1xf32> to vector<4x2xf32>
    %73 = vector.broadcast %cst_22 : f32 to vector<4x2xf32>
    %74 = arith.select %70, %72, %73 : vector<4x2xi1>, vector<4x2xf32>
    %75 = vector.broadcast %55 : vector<1x2xf32> to vector<4x2xf32>
    %76 = arith.addf %75, %74 : vector<4x2xf32>
    %c1 = arith.constant 1 : index
    %c0_23 = arith.constant 0 : index
    %77 = vector.load %arg2[%c1, %c0_23] : memref<8x128xf32, #tpu.memory_space<vmem>>, vector<1x128xf32>
    %78 = vector.broadcast %77 : vector<1x128xf32> to vector<4x128xf32>
    %79 = arith.mulf %20, %78 : vector<4x128xf32>
    %c3 = arith.constant 3 : index
    %c0_24 = arith.constant 0 : index
    %80 = vector.load %arg2[%c3, %c0_24] : memref<8x128xf32, #tpu.memory_space<vmem>>, vector<1x128xf32>
    %81 = vector.broadcast %80 : vector<1x128xf32> to vector<4x128xf32>
    %82 = arith.mulf %35, %81 : vector<4x128xf32>
    %83 = arith.addf %79, %82 : vector<4x128xf32>
    %c5 = arith.constant 5 : index
    %c0_25 = arith.constant 0 : index
    %84 = vector.load %arg2[%c5, %c0_25] : memref<8x128xf32, #tpu.memory_space<vmem>>, vector<1x128xf32>
    %85 = vector.broadcast %84 : vector<1x128xf32> to vector<4x128xf32>
    %86 = arith.mulf %53, %85 : vector<4x128xf32>
    %87 = arith.addf %83, %86 : vector<4x128xf32>
    %cst_26 = arith.constant dense<0.000000e+00> : vector<4xf32>
    %88 = vector.multi_reduction <add>, %87, %cst_26 [1] : vector<4x128xf32> to vector<4xf32>
    %89 = vector.shape_cast %88 : vector<4xf32> to vector<4x1xf32>
    %c1_i32 = arith.constant 1 : i32
    %90 = vector.broadcast %c1_i32 : i32 to vector<4x2xi32>
    %91 = arith.cmpi eq, %54, %90 : vector<4x2xi32>
    %cst_27 = arith.constant 0.000000e+00 : f32
    %92 = vector.shape_cast %89 : vector<4x1xf32> to vector<4x1xf32>
    %93 = vector.broadcast %92 : vector<4x1xf32> to vector<4x2xf32>
    %94 = vector.broadcast %cst_27 : f32 to vector<4x2xf32>
    %95 = arith.select %91, %93, %94 : vector<4x2xi1>, vector<4x2xf32>
    %96 = arith.addf %76, %95 : vector<4x2xf32>
    %c0_28 = arith.constant 0 : index
    %c0_29 = arith.constant 0 : index
    %97 = vector.load %arg4[%c0_28, %c0_29] : memref<4x2xf32, #tpu.memory_space<vmem>>, vector<4x2xf32>
    tpu.vector_store %arg4[%c0_28, %c0_29], %96 {strides = array<i32>} : memref<4x2xf32, #tpu.memory_space<vmem>>, vector<4x2xf32>,
    return
  }
}

</mosaic_0001>

<bundles_post_ra>
// kernel: textcnn_forward.1
= control target key start
LH: loop header
LB: loop body
LE: loop exit
PB: predicated region body
PF: predicated region fallthrough
CT: control target
= control target key end

     0   :  { %9 = vsyncpa [#allocation3], 0  ;;  %s1531_s15 = smov [#allocation2]   ;;  %s2075_s0 = inlined_call_operand.vmem [shape: s32[64,1], index: 0, kind: input, shape index: {}]   ;;  %s2076_s1 = inlined_call_operand.hbm [shape: f32[128,1152], index: 1, kind: input, shape index: {}]   ;;  %s2077_s2 = inlined_call_operand.vmem [shape: f32[8,128], index: 2, kind: input, shape index: {}]   ;;  %s2078_s3 = inlined_call_operand.vmem [shape: f32[1,2], index: 3, kind: input, shape index: {}]   ;;  %s2079_s4 = inlined_call_operand.vmem [shape: f32[4,2], index: 4, kind: output, shape index: {}]  }
   0x1   :  { %s17_s16 = sshll.u32 %s1531_s15, 4  ;;  %s1507_s19 = scalar_lea.hbm %s2076_s1, 18432  ;;  %s18_s16 = int_to_ptr.vmem [resolvable:$true] %s17_s16 }
   0x2   :  { %p1508_p0 = scmp.ne.s32.totalorder %s2076_s1, %s1507_s19  ;;  %p1511_p1 = scmp.lt.u32.totalorder %s1507_s19, %s2076_s1 }
   0x4   :  { %p1513_p2 = pnand %p1511_p1, %p1508_p0 }
   0x6   :  { %1516 = shalt.err (!%p1513_p2)
}
   0x7   :  { %s1517_s24 = scalar_lea.vmem %s18_s16, 18432  ;;  %p1522_p4 = scmp.lt.s32.totalorder %s18_s16, %s18_s16 }
   0x8   :  { %p1518_p3 = scmp.ne.s32.totalorder %s18_s16, %s1517_s24  ;;  %p1523_p5 = scmp.lt.s32.totalorder %s1517_s24, %s1517_s24 }
   0xa   :  { %p1524_p6 = por %p1523_p5, %p1522_p4 }
   0xc   :  { %p1525_p7 = pnand %p1524_p6, %p1518_p3 }
   0xe   :  { %1528 = shalt.err (!%p1525_p7)
}
   0xf   :  { %s1532_s25 = smov 1152   ;;  %s1533_s26 = smov 72  }
  0x10   :  { %23 = dma.hbm_to_vmem [thread:$0]  %s2076_s1, 18432, %s18_s16, [#allocation3], %s1532_s25, %s1532_s25, %s1533_s26  }
  0x11   :  { %1529 = dma.done.wait [#allocation3], 18432  }
  0x12   :  { %1530 = vsyncadd [#allocation3], 4294948864  ;;  %v1534_v0 = vmov 0   ;;  %v35_v1 = vld [vmem:[%s2075_s0 + $0x10] sm:$0xff]  ;;  %v33_v2 = vld [vmem:[%s2075_s0] sm:$0xff]  ;;  %v1535_v6 = vmov 0.0  }
  0x13   :  { %1506 = vset.pattern.permute.xlu1 %v1534_v0  ;;  %1505 = vset.pattern.permute.xlu0 %v1534_v0  ;;  %v36_v3 = vld [vmem:[%s2075_s0 + $0x18] sm:$0xff]  ;;  %v34_v4 = vld [vmem:[%s2075_s0 + $0x8] sm:$0xff]  ;;  %v99_v7 = vld [vmem:[#allocation2 + $0x50] sm:$0xff]  ;;  %vm1119_vm14 = vcmask 1041409   ;;  %vm1122_vm15 = vcmask 1042434  }
  0x14   :  { %48 = vperm.xlu1 %1506, %v35_v1   ;;  %42 = vperm.xlu0 %1505, %v33_v2   ;;  %v90_v5 = vld [vmem:[#allocation2 + $0x8] sm:$0xff]  ;;  %v92_v8 = vld [vmem:[#allocation2 + $0x18] sm:$0xff]  ;;  %v101_v9 = vld [vmem:[#allocation2 + $0x60] sm:$0xff] }
  0x15   :  { %297 = vmatprep.mubr.f32.mxu0 %v1535_v6  ;;  %410 = vmatprep.mubr.f32.mxu1 %v1535_v6  ;;  %v38_v10 = vld [vmem:[%s2075_s0 + $0x28] sm:$0xff]  ;;  %v37_v11 = vld [vmem:[%s2075_s0 + $0x20] sm:$0xff]  ;;  %v1323_v12 = vpack.c.bf16 %v99_v7, %v90_v5  ;;  %v1355_v13 = vpack.c.bf16 %v101_v9, %v92_v8  ;;  %v91_v16 = vld [vmem:[#allocation2 + $0x10] sm:$0xff] }
  0x16   :  { %v89_v14 = vld [vmem:[#allocation2] sm:$0xff]  ;;  %v98_v15 = vld [vmem:[#allocation2 + $0x48] sm:$0xff]  ;;  %v100_v18 = vld [vmem:[#allocation2 + $0x58] sm:$0xff] }
  0x17   :  { %v1325_v17 = vpack.c.bf16 %v98_v15, %v89_v14  ;;  %v108_v19 = vld [vmem:[#allocation2 + $0x98] sm:$0xff]  ;;  %v117_v20 = vld [vmem:[#allocation2 + $0xe0] sm:$0xff]  ;;  %1324 = vmatprep.subr.bf16.mxu0 %v1323_v12  ;;  %1356 = vmatprep.subr.bf16.mxu1 %v1355_v13  ;;  %v1357_v21 = vpack.c.bf16 %v100_v18, %v91_v16  ;;  %v110_v23 = vld [vmem:[#allocation2 + $0xa8] sm:$0xff] }
  0x18   :  { %51 = vperm.xlu1 %1506, %v36_v3   ;;  %45 = vperm.xlu0 %1505, %v34_v4   ;;  %v1327_v22 = vpack.c.bf16 %v117_v20, %v108_v19  ;;  %v119_v24 = vld [vmem:[#allocation2 + $0xf0] sm:$0xff]  ;;  %v116_v27 = vld [vmem:[#allocation2 + $0xd8] sm:$0xff]  ;;  %v109_v28 = vld [vmem:[#allocation2 + $0xa0] sm:$0xff] }
  0x19   :  { %v107_v25 = vld [vmem:[#allocation2 + $0x90] sm:$0xff]  ;;  %1326 = vmatpush1.bf16.msra.mxu0 %v1325_v17  ;;  %v1359_v26 = vpack.c.bf16 %v119_v24, %v110_v23  ;;  %v118_v29 = vld [vmem:[#allocation2 + $0xe8] sm:$0xff]  ;;  %v40_v30 = vld [vmem:[%s2075_s0 + $0x38] sm:$0xff]  ;;  %1358 = vmatpush1.bf16.msra.mxu1 %v1357_v21 }
  0x1a   :  { %v39_v31 = vld [vmem:[%s2075_s0 + $0x30] sm:$0xff]  ;;  %1328 = vmatprep.subr.bf16.mxu0 %v1327_v22  ;;  %v1329_v32 = vpack.c.bf16 %v116_v27, %v107_v25  ;;  %v1361_v33 = vpack.c.bf16 %v118_v29, %v109_v28  ;;  %v126_v34 = vld [vmem:[#allocation2 + $0x128] sm:$0xff]  ;;  %v128_v36 = vld [vmem:[#allocation2 + $0x138] sm:$0xff] }
  0x1b   :  { %v135_v35 = vld [vmem:[#allocation2 + $0x170] sm:$0xff]  ;;  %v137_v38 = vld [vmem:[#allocation2 + $0x180] sm:$0xff]  ;;  %v134_v40 = vld [vmem:[#allocation2 + $0x168] sm:$0xff]  ;;  %1360 = vmatprep.subr.bf16.mxu1 %v1359_v26 }
  0x1c   :  { %57 = vperm.xlu1 %1506, %v38_v10   ;;  %54 = vperm.xlu0 %1505, %v37_v11   ;;  %v1331_v37 = vpack.c.bf16 %v135_v35, %v126_v34  ;;  %v125_v39 = vld [vmem:[#allocation2 + $0x120] sm:$0xff]  ;;  %v1363_v41 = vpack.c.bf16 %v137_v38, %v128_v36  ;;  %v127_v42 = vld [vmem:[#allocation2 + $0x130] sm:$0xff]  ;;  %v136_v43 = vld [vmem:[#allocation2 + $0x178] sm:$0xff] }
  0x1d   :  { %v144_v44 = vld [vmem:[#allocation2 + $0x1b8] sm:$0xff]  ;;  %1330 = vmatpush1.bf16.msra.mxu0 %v1329_v32  ;;  %v1333_v45 = vpack.c.bf16 %v134_v40, %v125_v39  ;;  %v153_v46 = vld [vmem:[#allocation2 + $0x200] sm:$0xff]  ;;  %v146_v47 = vld [vmem:[#allocation2 + $0x1c8] sm:$0xff]  ;;  %1362 = vmatpush1.bf16.msra.mxu1 %v1361_v33  ;;  %v1365_v49 = vpack.c.bf16 %v136_v43, %v127_v42 }
  0x1e   :  { %v155_v48 = vld [vmem:[#allocation2 + $0x210] sm:$0xff]  ;;  %1332 = vmatprep.subr.bf16.mxu0 %v1331_v37  ;;  %v1335_v50 = vpack.c.bf16 %v153_v46, %v144_v44  ;;  %v152_v52 = vld [vmem:[#allocation2 + $0x1f8] sm:$0xff]  ;;  %v145_v53 = vld [vmem:[#allocation2 + $0x1c0] sm:$0xff]  ;;  %1364 = vmatprep.subr.bf16.mxu1 %v1363_v41 }
  0x1f   :  { %v143_v51 = vld [vmem:[#allocation2 + $0x1b0] sm:$0xff]  ;;  %v1367_v54 = vpack.c.bf16 %v155_v48, %v146_v47  ;;  %v154_v55 = vld [vmem:[#allocation2 + $0x208] sm:$0xff]  ;;  %v164_v58 = vld [vmem:[#allocation2 + $0x258] sm:$0xff] }
  0x20   :  { %63 = vperm.xlu1 %1506, %v40_v30   ;;  %60 = vperm.xlu0 %1505, %v39_v31   ;;  %v162_v56 = vld [vmem:[#allocation2 + $0x248] sm:$0xff]  ;;  %v171_v57 = vld [vmem:[#allocation2 + $0x290] sm:$0xff]  ;;  %v173_v59 = vld [vmem:[#allocation2 + $0x2a0] sm:$0xff]  ;;  %v1337_v60 = vpack.c.bf16 %v152_v52, %v143_v51  ;;  %v1369_v61 = vpack.c.bf16 %v154_v55, %v145_v53 }
  0x21   :  { %1334 = vmatpush1.bf16.msra.mxu0 %v1333_v45  ;;  %1366 = vmatpush1.bf16.msra.mxu1 %v1365_v49  ;;  %v1339_v62 = vpack.c.bf16 %v171_v57, %v162_v56  ;;  %v161_v63 = vld [vmem:[#allocation2 + $0x240] sm:$0xff]  ;;  %v170_v0 = vld [vmem:[#allocation2 + $0x288] sm:$0xff]  ;;  %v163_v1 = vld [vmem:[#allocation2 + $0x250] sm:$0xff]  ;;  %v1371_v2 = vpack.c.bf16 %v173_v59, %v164_v58  ;;  %v31_v49 = vlaneseq }
  0x22   :  { %1336 = vmatprep.subr.bf16.mxu0 %v1335_v50  ;;  %1368 = vmatprep.subr.bf16.mxu1 %v1367_v54  ;;  %v172_v3 = vld [vmem:[#allocation2 + $0x298] sm:$0xff]  ;;  %v189_v5 = vld [vmem:[#allocation2 + $0x320] sm:$0xff]  ;;  %v182_v7 = vld [vmem:[#allocation2 + $0x2e8] sm:$0xff]  ;;  %v1341_v9 = vpack.c.bf16 %v170_v0, %v161_v63 }
  0x23   :  { %v180_v4 = vld [vmem:[#allocation2 + $0x2d8] sm:$0xff]  ;;  %v191_v8 = vld [vmem:[#allocation2 + $0x330] sm:$0xff]  ;;  %v1373_v10 = vpack.c.bf16 %v172_v3, %v163_v1  ;;  %v181_v14 = vld [vmem:[#allocation2 + $0x2e0] sm:$0xff]  ;;  %v1601_v54 = vand.u32 127, %v31_v49 }
  0x24   :  { %v1343_v11 = vpack.c.bf16 %v189_v5, %v180_v4  ;;  %v179_v12 = vld [vmem:[#allocation2 + $0x2d0] sm:$0xff]  ;;  %v188_v13 = vld [vmem:[#allocation2 + $0x318] sm:$0xff]  ;;  %v1375_v15 = vpack.c.bf16 %v191_v8, %v182_v7  ;;  %v190_v16 = vld [vmem:[#allocation2 + $0x328] sm:$0xff]  ;;  %v1536_v7 = vmov 1.0  }
  0x25   :  { %1338 = vmatpush1.bf16.msra.mxu0 %v1337_v60  ;;  %1370 = vmatpush1.bf16.msra.mxu1 %v1369_v61  ;;  %v198_v17 = vld [vmem:[#allocation2 + $0x368] sm:$0xff]  ;;  %v207_v18 = vld [vmem:[#allocation2 + $0x3b0] sm:$0xff]  ;;  %v200_v19 = vld [vmem:[#allocation2 + $0x378] sm:$0xff]  ;;  %v1345_v21 = vpack.c.bf16 %v188_v13, %v179_v12  ;;  %v1377_v22 = vpack.c.bf16 %v190_v16, %v181_v14 }
  0x26   :  { %1340 = vmatprep.subr.bf16.mxu0 %v1339_v62  ;;  %1372 = vmatprep.subr.bf16.mxu1 %v1371_v2  ;;  %v209_v20 = vld [vmem:[#allocation2 + $0x3c0] sm:$0xff]  ;;  %v1347_v23 = vpack.c.bf16 %v207_v18, %v198_v17  ;;  %v206_v25 = vld [vmem:[#allocation2 + $0x3a8] sm:$0xff]  ;;  %v199_v26 = vld [vmem:[#allocation2 + $0x370] sm:$0xff] }
  0x27   :  { %v197_v24 = vld [vmem:[#allocation2 + $0x360] sm:$0xff]  ;;  %v1379_v27 = vpack.c.bf16 %v209_v20, %v200_v19  ;;  %v208_v28 = vld [vmem:[#allocation2 + $0x3b8] sm:$0xff]  ;;  %v218_v31 = vld [vmem:[#allocation2 + $0x408] sm:$0xff] }
  0x28   :  { %v216_v29 = vld [vmem:[#allocation2 + $0x3f8] sm:$0xff]  ;;  %v225_v30 = vld [vmem:[#allocation2 + $0x440] sm:$0xff]  ;;  %v227_v32 = vld [vmem:[#allocation2 + $0x450] sm:$0xff]  ;;  %v1349_v33 = vpack.c.bf16 %v206_v25, %v197_v24  ;;  %v1381_v34 = vpack.c.bf16 %v208_v28, %v199_v26  ;;  %v1798_v26 = vshrl.u32 %v31_v49, 7 }
  0x29   :  { %1342 = vmatpush1.bf16.msra.mxu0 %v1341_v9  ;;  %1374 = vmatpush1.bf16.msra.mxu1 %v1373_v10  ;;  %v1351_v35 = vpack.c.bf16 %v225_v30, %v216_v29  ;;  %v215_v36 = vld [vmem:[#allocation2 + $0x3f0] sm:$0xff]  ;;  %v224_v37 = vld [vmem:[#allocation2 + $0x438] sm:$0xff]  ;;  %v217_v38 = vld [vmem:[#allocation2 + $0x400] sm:$0xff]  ;;  %v1383_v39 = vpack.c.bf16 %v227_v32, %v218_v31 }
  0x2a   :  { %1344 = vmatprep.subr.bf16.mxu0 %v1343_v11  ;;  %1376 = vmatprep.subr.bf16.mxu1 %v1375_v15  ;;  %v226_v40 = vld [vmem:[#allocation2 + $0x448] sm:$0xff]  ;;  %v103_v42 = vld [vmem:[#allocation2 + $0x70] sm:$0xff]  ;;  %v96_v43 = vld [vmem:[#allocation2 + $0x38] sm:$0xff]  ;;  %v1353_v45 = vpack.c.bf16 %v224_v37, %v215_v36  ;;  %vm801_vm8 = vcmp.lt.s32.totalorder %v1798_v26, 7  ;;  %vm896_vm10 = vcmp.lt.s32.totalorder %v1798_v26, 6  ;;  %vm1015_vm12 = vcmp.lt.s32.totalorder %v1798_v26, 5 }
  0x2b   :  { %v94_v41 = vld [vmem:[#allocation2 + $0x28] sm:$0xff]  ;;  %v105_v44 = vld [vmem:[#allocation2 + $0x80] sm:$0xff]  ;;  %v1385_v46 = vpack.c.bf16 %v226_v40, %v217_v38  ;;  %v95_v52 = vld [vmem:[#allocation2 + $0x30] sm:$0xff] }
  0x2c   :  { %v1387_v47 = vpack.c.bf16 %v103_v42, %v94_v41  ;;  %v1419_v48 = vpack.c.bf16 %v105_v44, %v96_v43  ;;  %v93_v50 = vld [vmem:[#allocation2 + $0x20] sm:$0xff]  ;;  %v102_v51 = vld [vmem:[#allocation2 + $0x68] sm:$0xff]  ;;  %v104_v53 = vld [vmem:[#allocation2 + $0x78] sm:$0xff] }
  0x2d   :  { %1346 = vmatpush1.bf16.msra.mxu0 %v1345_v21  ;;  %1378 = vmatpush1.bf16.msra.mxu1 %v1377_v22  ;;  %v112_v55 = vld [vmem:[#allocation2 + $0xb8] sm:$0xff]  ;;  %v121_v56 = vld [vmem:[#allocation2 + $0x100] sm:$0xff]  ;;  %v114_v57 = vld [vmem:[#allocation2 + $0xc8] sm:$0xff]  ;;  %v1389_v59 = vpack.c.bf16 %v102_v51, %v93_v50  ;;  %v1421_v60 = vpack.c.bf16 %v104_v53, %v95_v52 }
  0x2e   :  { %1348 = vmatprep.subr.bf16.mxu0 %v1347_v23  ;;  %1380 = vmatprep.subr.bf16.mxu1 %v1379_v27  ;;  %v123_v58 = vld [vmem:[#allocation2 + $0x110] sm:$0xff]  ;;  %v120_v63 = vld [vmem:[#allocation2 + $0xf8] sm:$0xff]  ;;  %v113_v0 = vld [vmem:[#allocation2 + $0xc0] sm:$0xff]  ;;  %v1391_v3 = vpack.c.bf16 %v121_v56, %v112_v55 }
  0x2f   :  { %v111_v61 = vld [vmem:[#allocation2 + $0xb0] sm:$0xff]  ;;  %v122_v1 = vld [vmem:[#allocation2 + $0x108] sm:$0xff]  ;;  %v1423_v4 = vpack.c.bf16 %v123_v58, %v114_v57  ;;  %v132_v9 = vld [vmem:[#allocation2 + $0x158] sm:$0xff] }
  0x30   :  { %v130_v5 = vld [vmem:[#allocation2 + $0x148] sm:$0xff]  ;;  %v139_v8 = vld [vmem:[#allocation2 + $0x190] sm:$0xff]  ;;  %v141_v10 = vld [vmem:[#allocation2 + $0x1a0] sm:$0xff]  ;;  %v1393_v11 = vpack.c.bf16 %v120_v63, %v111_v61  ;;  %v1425_v12 = vpack.c.bf16 %v122_v1, %v113_v0 }
  0x31   :  { %1350 = vmatpush1.bf16.msra.mxu0 %v1349_v33  ;;  %1382 = vmatpush1.bf16.msra.mxu1 %v1381_v34  ;;  %v129_v13 = vld [vmem:[#allocation2 + $0x140] sm:$0xff]  ;;  %v138_v15 = vld [vmem:[#allocation2 + $0x188] sm:$0xff]  ;;  %v131_v16 = vld [vmem:[#allocation2 + $0x150] sm:$0xff]  ;;  %v1395_v19 = vpack.c.bf16 %v139_v8, %v130_v5  ;;  %v1427_v20 = vpack.c.bf16 %v141_v10, %v132_v9 }
  0x32   :  { %1352 = vmatprep.subr.bf16.mxu0 %v1351_v35  ;;  %1384 = vmatprep.subr.bf16.mxu1 %v1383_v39  ;;  %v140_v17 = vld [vmem:[#allocation2 + $0x198] sm:$0xff]  ;;  %v157_v23 = vld [vmem:[#allocation2 + $0x220] sm:$0xff]  ;;  %v150_v24 = vld [vmem:[#allocation2 + $0x1e8] sm:$0xff]  ;;  %v1397_v27 = vpack.c.bf16 %v138_v15, %v129_v13 }
  0x33   :  { %v148_v21 = vld [vmem:[#allocation2 + $0x1d8] sm:$0xff]  ;;  %v159_v25 = vld [vmem:[#allocation2 + $0x230] sm:$0xff]  ;;  %v1429_v28 = vpack.c.bf16 %v140_v17, %v131_v16  ;;  %v149_v31 = vld [vmem:[#allocation2 + $0x1e0] sm:$0xff] }
  0x34   :  { %v147_v29 = vld [vmem:[#allocation2 + $0x1d0] sm:$0xff]  ;;  %v156_v30 = vld [vmem:[#allocation2 + $0x218] sm:$0xff]  ;;  %v158_v32 = vld [vmem:[#allocation2 + $0x228] sm:$0xff]  ;;  %v1399_v33 = vpack.c.bf16 %v157_v23, %v148_v21  ;;  %v1431_v34 = vpack.c.bf16 %v159_v25, %v150_v24 }
  0x35   :  { %1354 = vmatpush1.bf16.msra.mxu0 %v1353_v45  ;;  %1386 = vmatpush1.bf16.msra.mxu1 %v1385_v46  ;;  %v166_v35 = vld [vmem:[#allocation2 + $0x268] sm:$0xff]  ;;  %v175_v36 = vld [vmem:[#allocation2 + $0x2b0] sm:$0xff]  ;;  %v168_v37 = vld [vmem:[#allocation2 + $0x278] sm:$0xff]  ;;  %v1401_v39 = vpack.c.bf16 %v156_v30, %v147_v29  ;;  %v1433_v40 = vpack.c.bf16 %v158_v32, %v149_v31 }
  0x36   :  { %1388 = vmatprep.subr.bf16.mxu0 %v1387_v47  ;;  %1420 = vmatprep.subr.bf16.mxu1 %v1419_v48  ;;  %v177_v38 = vld [vmem:[#allocation2 + $0x2c0] sm:$0xff]  ;;  %v174_v43 = vld [vmem:[#allocation2 + $0x2a8] sm:$0xff]  ;;  %v167_v44 = vld [vmem:[#allocation2 + $0x270] sm:$0xff]  ;;  %v1403_v47 = vpack.c.bf16 %v175_v36, %v166_v35 }
  0x37   :  { %v165_v41 = vld [vmem:[#allocation2 + $0x260] sm:$0xff]  ;;  %v176_v45 = vld [vmem:[#allocation2 + $0x2b8] sm:$0xff]  ;;  %v1435_v48 = vpack.c.bf16 %v177_v38, %v168_v37  ;;  %v186_v53 = vld [vmem:[#allocation2 + $0x308] sm:$0xff] }
  0x38   :  { %v184_v50 = vld [vmem:[#allocation2 + $0x2f8] sm:$0xff]  ;;  %v193_v52 = vld [vmem:[#allocation2 + $0x340] sm:$0xff]  ;;  %v195_v55 = vld [vmem:[#allocation2 + $0x350] sm:$0xff]  ;;  %v1405_v56 = vpack.c.bf16 %v174_v43, %v165_v41  ;;  %v1437_v57 = vpack.c.bf16 %v176_v45, %v167_v44 }
  0x39   :  { %v183_v58 = vld [vmem:[#allocation2 + $0x2f0] sm:$0xff]  ;;  %v194_v61 = vld [vmem:[#allocation2 + $0x348] sm:$0xff]  ;;  %v1407_v63 = vpack.c.bf16 %v193_v52, %v184_v50  ;;  %v1439_v0 = vpack.c.bf16 %v195_v55, %v186_v53  ;;  %v204_v5 = vld [vmem:[#allocation2 + $0x398] sm:$0xff] }
  0x3a   :  { %v202_v1 = vld [vmem:[#allocation2 + $0x388] sm:$0xff]  ;;  %v213_v8 = vld [vmem:[#allocation2 + $0x3e0] sm:$0xff]  ;;  %v203_v13 = vld [vmem:[#allocation2 + $0x390] sm:$0xff] }
  0x3b   :  { %v1443_v17 = vpack.c.bf16 %v213_v8, %v204_v5  ;;  %v229_v21 = vld [vmem:[#allocation2 + $0x460] sm:$0xff]  ;;  %v231_v23 = vld [vmem:[#allocation2 + $0x470] sm:$0xff]  ;;  %v230_v30 = vld [vmem:[#allocation2 + $0x468] sm:$0xff] }
  0x3c   :  { %v221_v29 = vld [vmem:[#allocation2 + $0x420] sm:$0xff]  ;;  %v106_v36 = vld [vmem:[#allocation2 + $0x88] sm:$0xff]  ;;  %v115_v41 = vld [vmem:[#allocation2 + $0xd0] sm:$0xff] }
  0x3d   :  { %v97_v35 = vld [vmem:[#allocation2 + $0x40] sm:$0xff]  ;;  %v1449_v38 = vpack.c.bf16 %v230_v30, %v221_v29  ;;  %v142_v45 = vld [vmem:[#allocation2 + $0x1a8] sm:$0xff]  ;;  %v160_v50 = vld [vmem:[#allocation2 + $0x238] sm:$0xff] }
  0x3e   :  { %v133_v44 = vld [vmem:[#allocation2 + $0x160] sm:$0xff]  ;;  %v178_v53 = vld [vmem:[#allocation2 + $0x2c8] sm:$0xff] }
  0x3f   :  { %v169_v52 = vld [vmem:[#allocation2 + $0x280] sm:$0xff] }
  0x40   :  { %v1467_v55 = vpack.c.bf16 %v178_v53, %v169_v52 }
  0x93   :  { %v43_v62 = vpop.permute.xlu0 %42  ;;  %v49_v22 = vpop.permute.xlu1 %48 }
  0x94   :  { %vm1604_vm0 = vcmp.eq.s32.totalorder %v1601_v54, %v43_v62  ;;  %vm1628_vm2 = vcmp.eq.s32.totalorder %v1601_v54, %v49_v22  ;;  %v222_v22 = vld [vmem:[#allocation2 + $0x428] sm:$0xff] }
  0x95   :  { %1208 = vmatmul.mubr.msk.f32.vlgmr.msra.gmra.mrb[0].mxu0 %vm1604_vm0, %v1536_v7  ;;  %1216 = vmatmul.mubr.msk.f32.vlgmr.msra.gmra.mrb[0].mxu1 %vm1604_vm0, %v1536_v7 }
  0x96   :  { %1390 = vmatpush1.bf16.msra.mxu0 %v1389_v59  ;;  %1422 = vmatpush1.bf16.msra.mxu1 %v1421_v60  ;;  %v192_v59 = vld [vmem:[#allocation2 + $0x338] sm:$0xff]  ;;  %v185_v60 = vld [vmem:[#allocation2 + $0x300] sm:$0xff] }
  0x97   :  { %v46_v14 = vpop.permute.xlu0 %45  ;;  %303 = vmatprep.mubr.f32.mxu0 %v1535_v6  ;;  %416 = vmatprep.mubr.f32.mxu1 %v1535_v6  ;;  %v52_v42 = vpop.permute.xlu1 %51  ;;  %v1409_v9 = vpack.c.bf16 %v192_v59, %v183_v58  ;;  %v1441_v10 = vpack.c.bf16 %v194_v61, %v185_v60  ;;  %v205_v59 = vld [vmem:[#allocation2 + $0x3a0] sm:$0xff]  ;;  %v214_v60 = vld [vmem:[#allocation2 + $0x3e8] sm:$0xff] }
  0x98   :  { %vm1617_vm1 = vcmp.eq.s32.totalorder %v1601_v54, %v46_v14  ;;  %1392 = vmatprep.subr.bf16.mxu0 %v1391_v3  ;;  %1424 = vmatprep.subr.bf16.mxu1 %v1423_v4  ;;  %vm1643_vm3 = vcmp.eq.s32.totalorder %v1601_v54, %v52_v42  ;;  %v211_v4 = vld [vmem:[#allocation2 + $0x3d0] sm:$0xff]  ;;  %v212_v14 = vld [vmem:[#allocation2 + $0x3d8] sm:$0xff]  ;;  %v1475_v61 = vpack.c.bf16 %v214_v60, %v205_v59 }
  0x99   :  { %1209 = vmatmul.mubr.msk.f32.gmra.mrb[2].mxu0 %vm1617_vm1, %v1536_v7  ;;  %1217 = vmatmul.mubr.msk.f32.gmra.mrb[2].mxu1 %vm1617_vm1, %v1536_v7  ;;  %v1411_v16 = vpack.c.bf16 %v211_v4, %v202_v1  ;;  %v1445_v25 = vpack.c.bf16 %v212_v14, %v203_v13  ;;  %v124_v42 = vld [vmem:[#allocation2 + $0x118] sm:$0xff] }
  0x9a   :  { %1394 = vmatpush1.bf16.msra.mxu0 %v1393_v11  ;;  %1426 = vmatpush1.bf16.msra.mxu1 %v1425_v12  ;;  %v201_v11 = vld [vmem:[#allocation2 + $0x380] sm:$0xff]  ;;  %v210_v12 = vld [vmem:[#allocation2 + $0x3c8] sm:$0xff]  ;;  %v1455_v43 = vpack.c.bf16 %v124_v42, %v115_v41 }
  0x9b   :  { %309 = vmatprep.mubr.f32.mxu0 %v1535_v6  ;;  %422 = vmatprep.mubr.f32.mxu1 %v1535_v6  ;;  %v55_v51 = vpop.permute.xlu0 %54  ;;  %v58_v3 = vpop.permute.xlu1 %57  ;;  %v1413_v24 = vpack.c.bf16 %v210_v12, %v201_v11 }
  0x9c   :  { %1396 = vmatprep.subr.bf16.mxu0 %v1395_v19  ;;  %1428 = vmatprep.subr.bf16.mxu1 %v1427_v20  ;;  %vm1656_vm4 = vcmp.eq.s32.totalorder %v1601_v54, %v55_v51  ;;  %vm1669_vm5 = vcmp.eq.s32.totalorder %v1601_v54, %v58_v3  ;;  %v220_v19 = vld [vmem:[#allocation2 + $0x418] sm:$0xff] }
  0x9d   :  { %1210 = vmatmul.mubr.msk.f32.gmra.mrb[4].mxu0 %vm1628_vm2, %v1536_v7  ;;  %1218 = vmatmul.mubr.msk.f32.gmra.mrb[4].mxu1 %vm1628_vm2, %v1536_v7  ;;  %v1415_v32 = vpack.c.bf16 %v229_v21, %v220_v19  ;;  %v1814_v19 = vadd.s32 8, %v1798_v26 }
  0x9e   :  { %1398 = vmatpush1.bf16.msra.mxu0 %v1397_v27  ;;  %1430 = vmatpush1.bf16.msra.mxu1 %v1429_v28  ;;  %v219_v27 = vld [vmem:[#allocation2 + $0x410] sm:$0xff]  ;;  %v228_v28 = vld [vmem:[#allocation2 + $0x458] sm:$0xff] }
  0x9f   :  { %315 = vmatprep.mubr.f32.mxu0 %v1535_v6  ;;  %428 = vmatprep.mubr.f32.mxu1 %v1535_v6  ;;  %v61_v20 = vpop.permute.xlu0 %60  ;;  %v1417_v37 = vpack.c.bf16 %v228_v28, %v219_v27  ;;  %vm827_vm9 = vcmp.le.s32.totalorder %v1814_v19, 14  ;;  %vm922_vm11 = vcmp.le.s32.totalorder %v1814_v19, 13  ;;  %vm1041_vm13 = vcmp.le.s32.totalorder %v1814_v19, 12 }
  0xa0   :  { %1400 = vmatprep.subr.bf16.mxu0 %v1399_v33  ;;  %1432 = vmatprep.subr.bf16.mxu1 %v1431_v34  ;;  %vm1682_vm6 = vcmp.eq.s32.totalorder %v1601_v54, %v61_v20  ;;  %v1447_v33 = vpack.c.bf16 %v231_v23, %v222_v22  ;;  %v64_v34 = vpop.permute.xlu1 %63 }
  0xa1   :  { %1211 = vmatmul.mubr.msk.f32.gmra.mrb[6].mxu0 %vm1643_vm3, %v1536_v7  ;;  %1219 = vmatmul.mubr.msk.f32.gmra.mrb[6].mxu1 %vm1643_vm3, %v1536_v7  ;;  %vm1695_vm7 = vcmp.eq.s32.totalorder %v1601_v54, %v64_v34 }
  0xa2   :  { %1402 = vmatpush1.bf16.msra.mxu0 %v1401_v39  ;;  %1434 = vmatpush1.bf16.msra.mxu1 %v1433_v40  ;;  %v1451_v40 = vpack.c.bf16 %v106_v36, %v97_v35 }
  0xa3   :  { %321 = vmatprep.mubr.f32.mxu0 %v1535_v6  ;;  %434 = vmatprep.mubr.f32.mxu1 %v1535_v6 }
  0xa4   :  { %1404 = vmatprep.subr.bf16.mxu0 %v1403_v47  ;;  %1436 = vmatprep.subr.bf16.mxu1 %v1435_v48  ;;  %v1459_v47 = vpack.c.bf16 %v142_v45, %v133_v44  ;;  %v151_v48 = vld [vmem:[#allocation2 + $0x1f0] sm:$0xff] }
  0xa5   :  { %1212 = vmatmul.mubr.msk.f32.gmra.mrb[8].mxu0 %vm1656_vm4, %v1536_v7  ;;  %1220 = vmatmul.mubr.msk.f32.gmra.mrb[8].mxu1 %vm1656_vm4, %v1536_v7  ;;  %v1463_v51 = vpack.c.bf16 %v160_v50, %v151_v48 }
  0xa6   :  { %1406 = vmatpush1.bf16.msra.mxu0 %v1405_v56  ;;  %1438 = vmatpush1.bf16.msra.mxu1 %v1437_v57  ;;  %v187_v56 = vld [vmem:[#allocation2 + $0x310] sm:$0xff]  ;;  %v196_v57 = vld [vmem:[#allocation2 + $0x358] sm:$0xff] }
  0xa7   :  { %327 = vmatprep.mubr.f32.mxu0 %v1535_v6  ;;  %440 = vmatprep.mubr.f32.mxu1 %v1535_v6  ;;  %v1471_v58 = vpack.c.bf16 %v196_v57, %v187_v56 }
  0xa8   :  { %1408 = vmatprep.subr.bf16.mxu0 %v1407_v63  ;;  %1440 = vmatprep.subr.bf16.mxu1 %v1439_v0  ;;  %v223_v63 = vld [vmem:[#allocation2 + $0x430] sm:$0xff]  ;;  %v232_v0 = vld [vmem:[#allocation2 + $0x478] sm:$0xff] }
  0xa9   :  { %1213 = vmatmul.mubr.msk.f32.gmra.mrb[10].mxu0 %vm1669_vm5, %v1536_v7  ;;  %1221 = vmatmul.mubr.msk.f32.gmra.mrb[10].mxu1 %vm1669_vm5, %v1536_v7  ;;  %v1479_v1 = vpack.c.bf16 %v232_v0, %v223_v63 }
  0xaa   :  { %1410 = vmatpush1.bf16.msra.mxu0 %v1409_v9  ;;  %1442 = vmatpush1.bf16.msra.mxu1 %v1441_v10 }
  0xab   :  { %333 = vmatprep.mubr.f32.mxu0 %v1535_v6  ;;  %446 = vmatprep.mubr.f32.mxu1 %v1535_v6 }
  0xac   :  { %1412 = vmatprep.subr.bf16.mxu0 %v1411_v16  ;;  %1444 = vmatprep.subr.bf16.mxu1 %v1443_v17 }
  0xad   :  { %1214 = vmatmul.mubr.msk.f32.gmra.mrb[12].mxu0 %vm1682_vm6, %v1536_v7  ;;  %1222 = vmatmul.mubr.msk.f32.gmra.mrb[12].mxu1 %vm1682_vm6, %v1536_v7 }
  0xae   :  { %1414 = vmatpush1.bf16.msra.mxu0 %v1413_v24  ;;  %1446 = vmatpush1.bf16.msra.mxu1 %v1445_v25 }
  0xaf   :  { %339 = vmatprep.mubr.f32.mxu0 %v1535_v6  ;;  %452 = vmatprep.mubr.f32.mxu1 %v1535_v6 }
  0xb0   :  { %1416 = vmatprep.subr.bf16.mxu0 %v1415_v32  ;;  %1448 = vmatprep.subr.bf16.mxu1 %v1447_v33 }
  0xb1   :  { %1215 = vmatmul.mubr.msk.f32.gmra.mrb[14].mxu0 %vm1695_vm7, %v1536_v7  ;;  %1223 = vmatmul.mubr.msk.f32.gmra.mrb[14].mxu1 %vm1695_vm7, %v1536_v7 }
  0xb2   :  { %1418 = vmatpush1.bf16.msra.mxu0 %v1417_v37  ;;  %1450 = vmatpush1.bf16.msra.mxu1 %v1449_v38 }
  0xb3   :  { %523 = vmatprep.mubr.f32.mxu0 %v1535_v6  ;;  %636 = vmatprep.mubr.f32.mxu1 %v1535_v6 }
  0xb4   :  { %1452 = vmatprep.subr.bf16.mxu0 %v1451_v40  ;;  %1483 = vmatprep.subr.bf16.mxu1 %v1451_v40 }
  0xb5   :  { %1224 = vmatmul.mubr.msk.f32.vlgmr.msra.gmra.mrb[16].mxu0 %vm1604_vm0, %v1536_v7  ;;  %1232 = vmatmul.mubr.msk.f32.vlgmr.msra.gmra.mrb[16].mxu1 %vm1604_vm0, %v1536_v7 }
  0xb6   :  { %1454 = vmatpush3.bf16.msra.mxu0 %v1451_v40  ;;  %1491 = vmatpush3.bf16.msra.mxu1 %v1451_v40 }
  0xb7   :  { %529 = vmatprep.mubr.f32.mxu0 %v1535_v6  ;;  %642 = vmatprep.mubr.f32.mxu1 %v1535_v6 }
  0xb8   :  { %1456 = vmatprep.subr.bf16.mxu0 %v1455_v43  ;;  %1484 = vmatprep.subr.bf16.mxu1 %v1455_v43 }
  0xb9   :  { %1225 = vmatmul.mubr.msk.f32.gmra.mrb[18].mxu0 %vm1617_vm1, %v1536_v7  ;;  %1233 = vmatmul.mubr.msk.f32.gmra.mrb[18].mxu1 %vm1617_vm1, %v1536_v7 }
  0xba   :  { %1458 = vmatpush3.bf16.msra.mxu0 %v1455_v43  ;;  %1492 = vmatpush3.bf16.msra.mxu1 %v1455_v43 }
  0xbb   :  { %535 = vmatprep.mubr.f32.mxu0 %v1535_v6  ;;  %648 = vmatprep.mubr.f32.mxu1 %v1535_v6 }
  0xbc   :  { %1460 = vmatprep.subr.bf16.mxu0 %v1459_v47  ;;  %1485 = vmatprep.subr.bf16.mxu1 %v1459_v47 }
  0xbd   :  { %1226 = vmatmul.mubr.msk.f32.gmra.mrb[20].mxu0 %vm1628_vm2, %v1536_v7  ;;  %1234 = vmatmul.mubr.msk.f32.gmra.mrb[20].mxu1 %vm1628_vm2, %v1536_v7 }
  0xbe   :  { %1462 = vmatpush3.bf16.msra.mxu0 %v1459_v47  ;;  %1493 = vmatpush3.bf16.msra.mxu1 %v1459_v47 }
  0xbf   :  { %541 = vmatprep.mubr.f32.mxu0 %v1535_v6  ;;  %654 = vmatprep.mubr.f32.mxu1 %v1535_v6 }
  0xc0   :  { %1464 = vmatprep.subr.bf16.mxu0 %v1463_v51  ;;  %1486 = vmatprep.subr.bf16.mxu1 %v1463_v51 }
  0xc1   :  { %1227 = vmatmul.mubr.msk.f32.gmra.mrb[22].mxu0 %vm1643_vm3, %v1536_v7  ;;  %1235 = vmatmul.mubr.msk.f32.gmra.mrb[22].mxu1 %vm1643_vm3, %v1536_v7 }
  0xc2   :  { %1466 = vmatpush3.bf16.msra.mxu0 %v1463_v51  ;;  %1494 = vmatpush3.bf16.msra.mxu1 %v1463_v51 }
  0xc3   :  { %547 = vmatprep.mubr.f32.mxu0 %v1535_v6  ;;  %660 = vmatprep.mubr.f32.mxu1 %v1535_v6 }
  0xc4   :  { %1468 = vmatprep.subr.bf16.mxu0 %v1467_v55  ;;  %1487 = vmatprep.subr.bf16.mxu1 %v1467_v55 }
  0xc5   :  { %1228 = vmatmul.mubr.msk.f32.gmra.mrb[24].mxu0 %vm1656_vm4, %v1536_v7  ;;  %1236 = vmatmul.mubr.msk.f32.gmra.mrb[24].mxu1 %vm1656_vm4, %v1536_v7 }
  0xc6   :  { %1470 = vmatpush3.bf16.msra.mxu0 %v1467_v55  ;;  %1495 = vmatpush3.bf16.msra.mxu1 %v1467_v55 }
  0xc7   :  { %553 = vmatprep.mubr.f32.mxu0 %v1535_v6  ;;  %666 = vmatprep.mubr.f32.mxu1 %v1535_v6 }
  0xc8   :  { %1472 = vmatprep.subr.bf16.mxu0 %v1471_v58  ;;  %1488 = vmatprep.subr.bf16.mxu1 %v1471_v58 }
  0xc9   :  { %1229 = vmatmul.mubr.msk.f32.gmra.mrb[26].mxu0 %vm1669_vm5, %v1536_v7  ;;  %1237 = vmatmul.mubr.msk.f32.gmra.mrb[26].mxu1 %vm1669_vm5, %v1536_v7 }
  0xca   :  { %1474 = vmatpush3.bf16.msra.mxu0 %v1471_v58  ;;  %1496 = vmatpush3.bf16.msra.mxu1 %v1471_v58 }
  0xcb   :  { %559 = vmatprep.mubr.f32.mxu0 %v1535_v6  ;;  %672 = vmatprep.mubr.f32.mxu1 %v1535_v6 }
  0xcc   :  { %1476 = vmatprep.subr.bf16.mxu0 %v1475_v61  ;;  %1489 = vmatprep.subr.bf16.mxu1 %v1475_v61 }
  0xcd   :  { %1230 = vmatmul.mubr.msk.f32.gmra.mrb[28].mxu0 %vm1682_vm6, %v1536_v7  ;;  %1238 = vmatmul.mubr.msk.f32.gmra.mrb[28].mxu1 %vm1682_vm6, %v1536_v7 }
  0xce   :  { %1478 = vmatpush3.bf16.msra.mxu0 %v1475_v61  ;;  %1497 = vmatpush3.bf16.msra.mxu1 %v1475_v61 }
  0xcf   :  { %565 = vmatprep.mubr.f32.mxu0 %v1535_v6  ;;  %678 = vmatprep.mubr.f32.mxu1 %v1535_v6 }
  0xd0   :  { %1480 = vmatprep.subr.bf16.mxu0 %v1479_v1  ;;  %1490 = vmatprep.subr.bf16.mxu1 %v1479_v1 }
  0xd1   :  { %1231 = vmatmul.mubr.msk.f32.gmra.mrb[30].mxu0 %vm1695_vm7, %v1536_v7  ;;  %1239 = vmatmul.mubr.msk.f32.gmra.mrb[30].mxu1 %vm1695_vm7, %v1536_v7 }
  0xd2   :  { %1482 = vmatpush3.bf16.msra.mxu0 %v1479_v1  ;;  %1498 = vmatpush3.bf16.msra.mxu1 %v1479_v1 }
  0xd3   :  { %1311 = vmatprep.mubr.msk.f32.mxu0 %vm1604_vm0, %v1536_v7  ;;  %1317 = vmatprep.mubr.msk.f32.mxu1 %vm1656_vm4, %v1536_v7  ;;  %vm1125_vm0 = vcmask 1043459   ;;  %vm1193_vm4 = vcmask 11264  }
  0xd5   :  { %1312 = vmatmul.mubr.msk.f32.vlgmr.msra.gmra.mrb[32].mxu0 %vm1617_vm1, %v1536_v7  ;;  %1318 = vmatmul.mubr.msk.f32.vlgmr.msra.gmra.mrb[32].mxu1 %vm1669_vm5, %v1536_v7  ;;  %vm1128_vm1 = vcmask 1043456  }
  0xd6   :  { %1314 = vmatprep.mubr.msk.f32.mxu0 %vm1628_vm2, %v1536_v7  ;;  %1320 = vmatprep.mubr.msk.f32.mxu1 %vm1682_vm6, %v1536_v7  ;;  %vm1132_vm2 = vcmp.eq.s32.totalorder %v1601_v54, 0 }
  0xd9   :  { %1315 = vmatmul.mubr.msk.f32.gmra.mrb[34].mxu0 %vm1643_vm3, %v1536_v7  ;;  %1321 = vmatmul.mubr.msk.f32.gmra.mrb[34].mxu1 %vm1695_vm7, %v1536_v7  ;;  %vm1190_vm3 = vcmp.eq.s32.totalorder %v1601_v54, 1 }
 0x168   :  { %v299_v6 = vpop.f32.mrb[0].mxu0  ;;  %v412_v2 = vpop.f32.mrb[0].mxu1 }
 0x169   :  { %v1793_v18 = vpop.f32.mrb[1].mxu0  ;;  %v1795_v62 = vpop.f32.mrb[1].mxu1 }
 0x16a   :  { %v793_v8 = vrot.slane %v1793_v18, 1  ;;  %v864_v9 = vrot.slane %v1795_v62, 1 }
 0x16c   :  { %v305_v3 = vpop.f32.mrb[2].mxu0  ;;  %v418_v4 = vpop.f32.mrb[2].mxu1 }
 0x16d   :  { %v307_v5 = vpop.f32.mrb[3].mxu0  ;;  %v420_v46 = vpop.f32.mrb[3].mxu1 }
 0x16e   :  { %v794_v7 = vrot.slane %v307_v5, 1  ;;  %v865_v10 = vrot.slane %v420_v46, 1 }
 0x170   :  { %v808_v11 = vsel %vm801_vm8, %v793_v8, %v794_v7  ;;  %v878_v49 = vsel %vm801_vm8, %v864_v9, %v865_v10  ;;  %v311_v12 = vpop.f32.mrb[4].mxu0  ;;  %v424_v13 = vpop.f32.mrb[4].mxu1 }
 0x171   :  { %v810_v14 = vadd.f32 %v808_v11, %v299_v6  ;;  %v1811_v15 = vadd.f32 %v878_v49, %v412_v2  ;;  %v313_v16 = vpop.f32.mrb[5].mxu0  ;;  %v426_v17 = vpop.f32.mrb[5].mxu1 }
 0x172   :  { %v795_v20 = vrot.slane %v313_v16, 1  ;;  %v866_v21 = vrot.slane %v426_v17, 1 }
 0x173   :  { %v818_v34 = vmax.f32 %v810_v14, 0.0 }
 0x174   :  { %v807_v22 = vsel %vm801_vm8, %v794_v7, %v795_v20  ;;  %v877_v23 = vsel %vm801_vm8, %v865_v10, %v866_v21  ;;  %v317_v24 = vpop.f32.mrb[6].mxu0  ;;  %v430_v25 = vpop.f32.mrb[6].mxu1 }
 0x175   :  { %v811_v27 = vadd.f32 %v807_v22, %v305_v3  ;;  %v1820_v28 = vadd.f32 %v877_v23, %v418_v4  ;;  %v319_v29 = vpop.f32.mrb[7].mxu0  ;;  %v432_v30 = vpop.f32.mrb[7].mxu1 }
 0x176   :  { %v796_v31 = vrot.slane %v319_v29, 1  ;;  %v867_v32 = vrot.slane %v432_v30, 1 }
 0x177   :  { %v819_v33 = vmax.f32 %v811_v27, 0.0 }
 0x178   :  { %v806_v35 = vsel %vm801_vm8, %v795_v20, %v796_v31  ;;  %v876_v36 = vsel %vm801_vm8, %v866_v21, %v867_v32  ;;  %v323_v37 = vpop.f32.mrb[8].mxu0  ;;  %v436_v38 = vpop.f32.mrb[8].mxu1 }
 0x179   :  { %v829_v39 = vsel %vm827_vm9, %v819_v33, 0.0  ;;  %v812_v40 = vadd.f32 %v806_v35, %v311_v12  ;;  %v1829_v41 = vadd.f32 %v876_v36, %v424_v13  ;;  %v325_v42 = vpop.f32.mrb[9].mxu0  ;;  %v438_v43 = vpop.f32.mrb[9].mxu1 }
 0x17a   :  { %v836_v44 = vmax.f32 %v818_v34, %v829_v39  ;;  %v797_v45 = vrot.slane %v325_v42, 1  ;;  %v868_v47 = vrot.slane %v438_v43, 1 }
 0x17b   :  { %v820_v0 = vmax.f32 %v812_v40, 0.0 }
 0x17c   :  { %v837_v48 = vrot.slane %v836_v44, 4  ;;  %v805_v50 = vsel %vm801_vm8, %v796_v31, %v797_v45  ;;  %v875_v51 = vsel %vm801_vm8, %v867_v32, %v868_v47  ;;  %v329_v52 = vpop.f32.mrb[10].mxu0  ;;  %v442_v53 = vpop.f32.mrb[10].mxu1 }
 0x17d   :  { %v813_v55 = vadd.f32 %v805_v50, %v317_v24  ;;  %v1835_v56 = vadd.f32 %v875_v51, %v430_v25  ;;  %v331_v57 = vpop.f32.mrb[11].mxu0  ;;  %v444_v58 = vpop.f32.mrb[11].mxu1 }
 0x17e   :  { %v798_v59 = vrot.slane %v331_v57, 1  ;;  %v869_v60 = vrot.slane %v444_v58, 1  ;;  %v838_v61 = vmax.f32 %v836_v44, %v837_v48 }
 0x17f   :  { %v821_v63 = vmax.f32 %v813_v55, 0.0 }
 0x180   :  { %v804_v1 = vsel %vm801_vm8, %v797_v45, %v798_v59  ;;  %v874_v6 = vsel %vm801_vm8, %v868_v47, %v869_v60  ;;  %v335_v2 = vpop.f32.mrb[12].mxu0  ;;  %v448_v3 = vpop.f32.mrb[12].mxu1  ;;  %v839_v13 = vrot.slane %v838_v61, 2 }
 0x181   :  { %v831_v4 = vsel %vm827_vm9, %v821_v63, 0.0  ;;  %v814_v5 = vadd.f32 %v804_v1, %v323_v37  ;;  %v1843_v46 = vadd.f32 %v874_v6, %v436_v38  ;;  %v337_v7 = vpop.f32.mrb[13].mxu0  ;;  %v450_v10 = vpop.f32.mrb[13].mxu1 }
 0x182   :  { %v843_v11 = vmax.f32 %v820_v0, %v831_v4  ;;  %v799_v49 = vrot.slane %v337_v7, 1  ;;  %v870_v12 = vrot.slane %v450_v10, 1  ;;  %v840_v31 = vmax.f32 %v838_v61, %v839_v13 }
 0x183   :  { %v822_v32 = vmax.f32 %v814_v5, 0.0 }
 0x184   :  { %v844_v14 = vrot.slane %v843_v11, 4  ;;  %v803_v16 = vsel %vm801_vm8, %v798_v59, %v799_v49  ;;  %v873_v17 = vsel %vm801_vm8, %v869_v60, %v870_v12  ;;  %v341_v20 = vpop.f32.mrb[14].mxu0  ;;  %v454_v21 = vpop.f32.mrb[14].mxu1  ;;  %v841_v50 = vrot.slane %v840_v31, 1 }
 0x185   :  { %v815_v22 = vadd.f32 %v803_v16, %v329_v52  ;;  %v1849_v23 = vadd.f32 %v873_v17, %v442_v53  ;;  %v343_v24 = vpop.f32.mrb[15].mxu0  ;;  %v456_v25 = vpop.f32.mrb[15].mxu1  ;;  %v1893_v16 = vld [vmem:[%s2077_s2 + $0x1] ss:$0 sm:$0xff] }
 0x186   :  { %v845_v27 = vmax.f32 %v843_v11, %v844_v14  ;;  %v800_v29 = vrot.slane %v343_v24, 1  ;;  %v871_v30 = vrot.slane %v456_v25, 1 }
 0x187   :  { %v823_v33 = vmax.f32 %v815_v22, 0.0 }
 0x188   :  { %v846_v34 = vrot.slane %v845_v27, 2  ;;  %v802_v35 = vsel %vm801_vm8, %v799_v49, %v800_v29  ;;  %v809_v36 = vsel %vm801_vm8, %v800_v29, %v793_v8  ;;  %v872_v37 = vsel %vm801_vm8, %v870_v12, %v871_v30  ;;  %v1859_v38 = vpop.f32.mrb[16].mxu0  ;;  %v1861_v39 = vpop.f32.mrb[16].mxu1 }
 0x189   :  { %v833_v40 = vsel %vm827_vm9, %v823_v33, 0.0  ;;  %v816_v42 = vadd.f32 %v802_v35, %v335_v2  ;;  %v817_v43 = vadd.f32 %v809_v36, %v341_v20  ;;  %v879_v18 = vsel %vm801_vm8, %v871_v30, %v864_v9  ;;  %v527_v44 = vpop.f32.mrb[17].mxu0  ;;  %v1869_v45 = vpop.f32.mrb[17].mxu1 }
 0x18a   :  { %v850_v8 = vmax.f32 %v822_v32, %v833_v40  ;;  %v1871_v47 = vadd.f32 %v872_v37, %v448_v3  ;;  %v1873_v48 = vadd.f32 %v879_v18, %v454_v21  ;;  %v847_v53 = vmax.f32 %v845_v27, %v846_v34 }
 0x18b   :  { %v824_v51 = vmax.f32 %v816_v42, 0.0  ;;  %v825_v52 = vmax.f32 %v817_v43, 0.0  ;;  %v888_v62 = vrot.slane %v1859_v38, 2  ;;  %v959_v59 = vrot.slane %v1861_v39, 1 }
 0x18c   :  { %v851_v55 = vrot.slane %v850_v8, 4  ;;  %v531_v57 = vpop.f32.mrb[18].mxu0  ;;  %v644_v58 = vpop.f32.mrb[18].mxu1  ;;  %v842_v3 = vmax.f32 %v840_v31, %v841_v50  ;;  %v983_v4 = vrot.slane %v1869_v45, 2  ;;  %v848_v17 = vrot.slane %v847_v53, 1 }
 0x18d   :  { %v835_v9 = vsel %vm827_vm9, %v825_v52, 0.0  ;;  %v889_v60 = vrot.slane %v531_v57, 2  ;;  %v960_v61 = vrot.slane %v644_v58, 1  ;;  %v533_v63 = vpop.f32.mrb[19].mxu0  ;;  %v646_v0 = vpop.f32.mrb[19].mxu1 }
 0x18e   :  { %v852_v1 = vmax.f32 %v850_v8, %v851_v55  ;;  %v857_v6 = vmax.f32 %v824_v51, %v835_v9  ;;  %v984_v2 = vrot.slane %v646_v0, 2  ;;  %v1908_v40 = vmul.f32 %v1893_v16, %v842_v3 }
 0x18f   :  { %v903_v5 = vsel %vm896_vm10, %v888_v62, %v889_v60  ;;  %v973_v7 = vsel %vm801_vm8, %v959_v59, %v960_v61  ;;  %v849_v42 = vmax.f32 %v847_v53, %v848_v17 }
 0x190   :  { %v853_v10 = vrot.slane %v852_v1, 2  ;;  %v858_v11 = vrot.slane %v857_v6, 4  ;;  %v905_v49 = vadd.f32 %v903_v5, %v1811_v15  ;;  %v975_v12 = vadd.f32 %v973_v7, %v527_v44  ;;  %v537_v13 = vpop.f32.mrb[20].mxu0  ;;  %v650_v14 = vpop.f32.mrb[20].mxu1 }
 0x191   :  { %v997_v20 = vsel %vm896_vm10, %v983_v4, %v984_v2  ;;  %v890_v21 = vrot.slane %v537_v13, 2  ;;  %v961_v22 = vrot.slane %v650_v14, 1  ;;  %v539_v24 = vpop.f32.mrb[21].mxu0  ;;  %v652_v25 = vpop.f32.mrb[21].mxu1 }
 0x192   :  { %v859_v27 = vmax.f32 %v857_v6, %v858_v11  ;;  %v1899_v15 = vadd.f32 %v997_v20, %v975_v12  ;;  %v854_v29 = vmax.f32 %v852_v1, %v853_v10  ;;  %v985_v32 = vrot.slane %v652_v25, 2 }
 0x193   :  { %v902_v30 = vsel %vm896_vm10, %v889_v60, %v890_v21  ;;  %v972_v31 = vsel %vm801_vm8, %v960_v61, %v961_v22  ;;  %v913_v9 = vmax.f32 %v905_v49, 0.0 }
 0x194   :  { %v860_v33 = vrot.slane %v859_v27, 2  ;;  %v906_v34 = vadd.f32 %v902_v30, %v1820_v28  ;;  %v976_v35 = vadd.f32 %v972_v31, %v533_v63  ;;  %v543_v36 = vpop.f32.mrb[22].mxu0  ;;  %v656_v37 = vpop.f32.mrb[22].mxu1  ;;  %v996_v43 = vsel %vm896_vm10, %v984_v2, %v985_v32  ;;  %v1917_v28 = vld [vmem:[%s2077_s2] ss:$0 sm:$0xff] }
 0x195   :  { %v891_v18 = vrot.slane %v543_v36, 2  ;;  %v962_v44 = vrot.slane %v656_v37, 1  ;;  %v545_v8 = vpop.f32.mrb[23].mxu0  ;;  %v658_v50 = vpop.f32.mrb[23].mxu1  ;;  %v855_v58 = vrot.slane %v854_v29, 1  ;;  %v1929_v12 = vmul.f32 %v1917_v28, %v842_v3 }
 0x196   :  { %v861_v51 = vmax.f32 %v859_v27, %v860_v33  ;;  %v914_v52 = vmax.f32 %v906_v34, 0.0  ;;  %v1912_v55 = vadd.f32 %v996_v43, %v976_v35  ;;  %v986_v57 = vrot.slane %v658_v50, 2 }
 0x197   :  { %v901_v53 = vsel %vm896_vm10, %v890_v21, %v891_v18  ;;  %v971_v60 = vsel %vm801_vm8, %v961_v22, %v962_v44 }
 0x198   :  { %v924_v61 = vsel %vm922_vm11, %v914_v52, 0.0  ;;  %v907_v63 = vadd.f32 %v901_v53, %v1829_v41  ;;  %v977_v0 = vadd.f32 %v971_v60, %v539_v24  ;;  %v995_v1 = vsel %vm896_vm10, %v985_v32, %v986_v57  ;;  %v549_v6 = vpop.f32.mrb[24].mxu0  ;;  %v662_v2 = vpop.f32.mrb[24].mxu1 }
 0x199   :  { %v931_v5 = vmax.f32 %v913_v9, %v924_v61  ;;  %v892_v7 = vrot.slane %v549_v6, 2  ;;  %v963_v10 = vrot.slane %v662_v2, 1  ;;  %v551_v11 = vpop.f32.mrb[25].mxu0  ;;  %v664_v49 = vpop.f32.mrb[25].mxu1  ;;  %v862_v17 = vrot.slane %v861_v51, 1 }
 0x19a   :  { %v1931_v13 = vadd.f32 %v995_v1, %v977_v0  ;;  %v987_v14 = vrot.slane %v664_v49, 2  ;;  %v1934_v41 = vmul.f32 %v1893_v16, %v849_v42  ;;  %v856_v24 = vmax.f32 %v854_v29, %v855_v58 }
 0x19b   :  { %v932_v20 = vrot.slane %v931_v5, 4  ;;  %v900_v21 = vsel %vm896_vm10, %v891_v18, %v892_v7  ;;  %v970_v22 = vsel %vm801_vm8, %v962_v44, %v963_v10  ;;  %v1944_v32 = vmul.f32 %v1917_v28, %v849_v42 }
 0x19c   :  { %v908_v25 = vadd.f32 %v900_v21, %v1835_v56  ;;  %v978_v27 = vadd.f32 %v970_v22, %v545_v8  ;;  %v994_v3 = vsel %vm896_vm10, %v986_v57, %v987_v14  ;;  %v555_v30 = vpop.f32.mrb[26].mxu0  ;;  %v668_v31 = vpop.f32.mrb[26].mxu1  ;;  %v915_v34 = vmax.f32 %v907_v63, 0.0 }
 0x19d   :  { %v933_v33 = vmax.f32 %v931_v5, %v932_v20  ;;  %v893_v35 = vrot.slane %v555_v30, 2  ;;  %v964_v36 = vrot.slane %v668_v31, 1  ;;  %v557_v37 = vpop.f32.mrb[27].mxu0  ;;  %v670_v43 = vpop.f32.mrb[27].mxu1  ;;  %v863_v56 = vmax.f32 %v861_v51, %v862_v17 }
 0x19e   :  { %v916_v18 = vmax.f32 %v908_v25, 0.0  ;;  %v1946_v44 = vadd.f32 %v994_v3, %v978_v27  ;;  %v988_v29 = vrot.slane %v670_v43, 2  ;;  %v1953_v42 = vmul.f32 %v1893_v16, %v856_v24 }
 0x19f   :  { %v934_v8 = vrot.slane %v933_v33, 2  ;;  %v899_v50 = vsel %vm896_vm10, %v892_v7, %v893_v35  ;;  %v969_v52 = vsel %vm801_vm8, %v963_v10, %v964_v36  ;;  %v1963_v10 = vmul.f32 %v1893_v16, %v863_v56 }
 0x1a0   :  { %v926_v57 = vsel %vm922_vm11, %v916_v18, 0.0  ;;  %v909_v58 = vadd.f32 %v899_v50, %v1843_v46  ;;  %v979_v9 = vadd.f32 %v969_v52, %v551_v11  ;;  %v993_v53 = vsel %vm896_vm10, %v987_v14, %v988_v29  ;;  %v561_v51 = vpop.f32.mrb[28].mxu0  ;;  %v674_v60 = vpop.f32.mrb[28].mxu1 }
 0x1a1   :  { %v935_v61 = vmax.f32 %v933_v33, %v934_v8  ;;  %v938_v63 = vmax.f32 %v915_v34, %v926_v57  ;;  %v894_v0 = vrot.slane %v561_v51, 2  ;;  %v965_v1 = vrot.slane %v674_v60, 1  ;;  %v563_v6 = vpop.f32.mrb[29].mxu0  ;;  %v676_v2 = vpop.f32.mrb[29].mxu1 }
 0x1a2   :  { %v1960_v5 = vadd.f32 %v993_v53, %v979_v9  ;;  %v989_v7 = vrot.slane %v676_v2, 2  ;;  %v1966_v46 = vmul.f32 %v1917_v28, %v856_v24  ;;  %v1977_v24 = vmul.f32 %v1917_v28, %v863_v56 }
 0x1a3   :  { %v936_v11 = vrot.slane %v935_v61, 1  ;;  %v939_v49 = vrot.slane %v938_v63, 4  ;;  %v898_v14 = vsel %vm896_vm10, %v893_v35, %v894_v0  ;;  %v968_v17 = vsel %vm801_vm8, %v964_v36, %v965_v1 }
 0x1a4   :  { %v910_v20 = vadd.f32 %v898_v14, %v1849_v23  ;;  %v980_v21 = vadd.f32 %v968_v17, %v557_v37  ;;  %v992_v16 = vsel %vm896_vm10, %v988_v29, %v989_v7  ;;  %v567_v22 = vpop.f32.mrb[30].mxu0  ;;  %v680_v25 = vpop.f32.mrb[30].mxu1  ;;  %v917_v3 = vmax.f32 %v909_v58, 0.0 }
 0x1a5   :  { %v940_v27 = vmax.f32 %v938_v63, %v939_v49  ;;  %v895_v30 = vrot.slane %v567_v22, 2  ;;  %v966_v31 = vrot.slane %v680_v25, 1  ;;  %v569_v33 = vpop.f32.mrb[31].mxu0  ;;  %v682_v34 = vpop.f32.mrb[31].mxu1  ;;  %v1979_v35 = vmax.f32 %v935_v61, %v936_v11 }
 0x1a6   :  { %v918_v36 = vmax.f32 %v910_v20, 0.0  ;;  %v1981_v43 = vadd.f32 %v992_v16, %v980_v21  ;;  %v990_v23 = vrot.slane %v682_v34, 2 }
 0x1a7   :  { %v941_v37 = vrot.slane %v940_v27, 2  ;;  %v897_v18 = vsel %vm896_vm10, %v894_v0, %v895_v30  ;;  %v904_v28 = vsel %vm896_vm10, %v895_v30, %v888_v62  ;;  %v967_v29 = vsel %vm801_vm8, %v965_v1, %v966_v31 }
 0x1a8   :  { %v928_v56 = vsel %vm922_vm11, %v918_v36, 0.0  ;;  %v911_v8 = vadd.f32 %v897_v18, %v1871_v47  ;;  %v912_v50 = vadd.f32 %v904_v28, %v1873_v48  ;;  %v981_v52 = vadd.f32 %v967_v29, %v563_v6  ;;  %v1313_v57 = vpop.f32.mrb[32].mxu0  ;;  %v1995_v58 = vpop.f32.mrb[32].mxu1 }
 0x1a9   :  { %v942_v9 = vmax.f32 %v940_v27, %v941_v37  ;;  %v945_v53 = vmax.f32 %v917_v3, %v928_v56  ;;  %v974_v38 = vsel %vm801_vm8, %v966_v31, %v959_v59  ;;  %v991_v62 = vsel %vm896_vm10, %v989_v7, %v990_v23  ;;  %v751_v51 = vpop.f32.mrb[33].mxu0  ;;  %v771_v60 = vpop.f32.mrb[33].mxu1 }
 0x1aa   :  { %v919_v61 = vmax.f32 %v911_v8, 0.0  ;;  %v920_v47 = vmax.f32 %v912_v50, 0.0  ;;  %v982_v63 = vadd.f32 %v974_v38, %v569_v33  ;;  %v998_v48 = vsel %vm896_vm10, %v990_v23, %v983_v4 }
 0x1ab   :  { %v943_v0 = vrot.slane %v942_v9, 1  ;;  %v946_v39 = vrot.slane %v945_v53, 4  ;;  %v1005_v1 = vadd.f32 %v991_v62, %v981_v52  ;;  %v1008_v6 = vrot.slane %v1313_v57, 3 }
 0x1ac   :  { %v930_v59 = vsel %vm922_vm11, %v920_v47, 0.0  ;;  %v1006_v2 = vadd.f32 %v998_v48, %v982_v63  ;;  %v1012_v7 = vrot.slane %v1995_v58, 3  ;;  %v1007_v11 = vrot.slane %v751_v51, 3  ;;  %v1316_v49 = vpop.f32.mrb[34].mxu0  ;;  %v1322_v14 = vpop.f32.mrb[34].mxu1 }
 0x1ad   :  { %v2011_v17 = vmax.f32 %v942_v9, %v943_v0  ;;  %v947_v45 = vmax.f32 %v945_v53, %v946_v39  ;;  %v952_v20 = vmax.f32 %v919_v61, %v930_v59  ;;  %v1011_v4 = vrot.slane %v771_v60, 3  ;;  %v761_v21 = vpop.f32.mrb[35].mxu0  ;;  %v781_v16 = vpop.f32.mrb[35].mxu1 }
 0x1ae   :  { %v1022_v22 = vsel %vm1015_vm12, %v1007_v11, %v1008_v6  ;;  %v1010_v25 = vrot.slane %v1316_v49, 3  ;;  %v1014_v27 = vrot.slane %v1322_v14, 3  ;;  %v1009_v3 = vrot.slane %v761_v21, 3 }
 0x1af   :  { %v948_v30 = vrot.slane %v947_v45, 2  ;;  %v953_v31 = vrot.slane %v952_v20, 4  ;;  %v1024_v33 = vadd.f32 %v1022_v22, %v1899_v15  ;;  %v1018_v34 = vsel %vm1015_vm12, %v1011_v4, %v1012_v7  ;;  %v1253_v15 = vld [vmem:[%s2077_s2 + $0x3] ss:$0 sm:$0xff] }
 0x1b0   :  { %v1028_v36 = vadd.f32 %v1018_v34, %v1960_v5  ;;  %v1019_v23 = vsel %vm1015_vm12, %v1010_v25, %v1011_v4  ;;  %v1023_v37 = vsel %vm1015_vm12, %v1014_v27, %v1007_v11  ;;  %v1020_v18 = vsel %vm1015_vm12, %v1009_v3, %v1010_v25  ;;  %v1249_v4 = vld [vmem:[%s2077_s2 + $0x2] ss:$0 sm:$0xff] }
 0x1b1   :  { %v949_v28 = vmax.f32 %v947_v45, %v948_v30  ;;  %v954_v29 = vmax.f32 %v952_v20, %v953_v31  ;;  %v1032_v56 = vmax.f32 %v1024_v33, 0.0  ;;  %v1027_v8 = vadd.f32 %v1019_v23, %v1946_v44 }
 0x1b2   :  { %v1036_v50 = vmax.f32 %v1028_v36, 0.0  ;;  %v1031_v5 = vadd.f32 %v1023_v37, %v1006_v2  ;;  %v1021_v52 = vsel %vm1015_vm12, %v1008_v6, %v1009_v3  ;;  %v1026_v57 = vadd.f32 %v1020_v18, %v1931_v13 }
 0x1b3   :  { %v950_v58 = vrot.slane %v949_v28, 1  ;;  %v955_v9 = vrot.slane %v954_v29, 2  ;;  %v1035_v53 = vmax.f32 %v1027_v8, 0.0  ;;  %v1025_v38 = vadd.f32 %v1021_v52, %v1912_v55 }
 0x1b4   :  { %v1039_v62 = vmax.f32 %v1031_v5, 0.0  ;;  %v1034_v51 = vmax.f32 %v1026_v57, 0.0  ;;  %v1013_v60 = vrot.slane %v781_v16, 3  ;;  %v1155_v44 = vmul.f32 %v1253_v15, %v1979_v35  ;;  %v1250_v57 = vld [vmem:[%s2077_s2 + $0x4] ss:$0 sm:$0xff] }
 0x1b5   :  { %v956_v61 = vmax.f32 %v954_v29, %v955_v9  ;;  %v1045_v47 = vsel %vm1041_vm13, %v1035_v53, 0.0  ;;  %v1033_v63 = vmax.f32 %v1025_v38, 0.0  ;;  %v951_v48 = vmax.f32 %v949_v28, %v950_v58 }
 0x1b6   :  { %v1049_v0 = vsel %vm1041_vm13, %v1039_v62, 0.0  ;;  %v1057_v13 = vmax.f32 %v1034_v51, %v1045_v47  ;;  %v1016_v39 = vsel %vm1015_vm12, %v1013_v60, %v1014_v27  ;;  %v1017_v55 = vsel %vm1015_vm12, %v1012_v7, %v1013_v60 }
 0x1b7   :  { %v1043_v6 = vsel %vm1041_vm13, %v1033_v63, 0.0  ;;  %v1029_v59 = vadd.f32 %v1017_v55, %v1981_v43  ;;  %v1030_v2 = vadd.f32 %v1016_v39, %v1005_v1  ;;  %v957_v11 = vrot.slane %v956_v61, 1 }
 0x1b8   :  { %v1050_v49 = vmax.f32 %v1032_v56, %v1043_v6  ;;  %v1058_v14 = vrot.slane %v1057_v13, 4  ;;  %v1156_v45 = vmul.f32 %v1253_v15, %v2011_v17  ;;  %v1157_v20 = vmul.f32 %v1253_v15, %v951_v48 }
 0x1b9   :  { %v1037_v21 = vmax.f32 %v1029_v59, 0.0  ;;  %v1038_v16 = vmax.f32 %v1030_v2, 0.0  ;;  %v958_v26 = vmax.f32 %v956_v61, %v957_v11  ;;  %v1159_v7 = vadd.f32 %v1155_v44, %v1908_v40 }
 0x1ba   :  { %v1051_v22 = vrot.slane %v1050_v49, 4  ;;  %v1059_v25 = vmax.f32 %v1057_v13, %v1058_v14  ;;  %v1160_v43 = vadd.f32 %v1156_v45, %v1934_v41  ;;  %v1161_v1 = vadd.f32 %v1157_v20, %v1953_v42 }
 0x1bb   :  { %v1047_v27 = vsel %vm1041_vm13, %v1037_v21, 0.0  ;;  %v1071_v3 = vmax.f32 %v1038_v16, %v1049_v0  ;;  %v1158_v30 = vmul.f32 %v1253_v15, %v958_v26  ;;  %v1093_v31 = vmul.f32 %v1249_v4, %v1979_v35 }
 0x1bc   :  { %v1052_v33 = vmax.f32 %v1050_v49, %v1051_v22  ;;  %v1060_v34 = vrot.slane %v1059_v25, 2  ;;  %v1064_v36 = vmax.f32 %v1036_v50, %v1047_v27  ;;  %v1094_v23 = vmul.f32 %v1249_v4, %v2011_v17 }
 0x1bd   :  { %v1072_v37 = vrot.slane %v1071_v3, 4  ;;  %v1162_v40 = vadd.f32 %v1158_v30, %v1963_v10  ;;  %v1095_v18 = vmul.f32 %v1249_v4, %v951_v48  ;;  %v1096_v28 = vmul.f32 %v1249_v4, %v958_v26  ;;  %v1254_v10 = vld [vmem:[%s2077_s2 + $0x5] ss:$0 sm:$0xff] }
 0x1be   :  { %v1053_v41 = vrot.slane %v1052_v33, 2  ;;  %v1061_v29 = vmax.f32 %v1059_v25, %v1060_v34  ;;  %v1065_v42 = vrot.slane %v1064_v36, 4  ;;  %v1097_v19 = vadd.f32 %v1093_v31, %v1929_v12 }
 0x1bf   :  { %v1073_v56 = vmax.f32 %v1071_v3, %v1072_v37  ;;  %v1098_v8 = vadd.f32 %v1094_v23, %v1944_v32  ;;  %v1099_v35 = vadd.f32 %v1095_v18, %v1966_v46  ;;  %v1100_v15 = vadd.f32 %v1096_v28, %v1977_v24 }
 0x1c0   :  { %v1054_v50 = vmax.f32 %v1052_v33, %v1053_v41  ;;  %v1062_v5 = vrot.slane %v1061_v29, 1  ;;  %v1066_v17 = vmax.f32 %v1064_v36, %v1065_v42 }
 0x1c1   :  { %v1074_v52 = vrot.slane %v1073_v56, 2 }
 0x1c2   :  { %v1055_v12 = vrot.slane %v1054_v50, 1  ;;  %v1063_v58 = vmax.f32 %v1061_v29, %v1062_v5  ;;  %v1067_v9 = vrot.slane %v1066_v17, 2 }
 0x1c3   :  { %v1075_v32 = vmax.f32 %v1073_v56, %v1074_v52 }
 0x1c4   :  { %v1068_v53 = vmax.f32 %v1066_v17, %v1067_v9  ;;  %v1056_v46 = vmax.f32 %v1054_v50, %v1055_v12  ;;  %v1169_v38 = vmul.f32 %v1254_v10, %v1063_v58  ;;  %v1107_v24 = vmul.f32 %v1250_v57, %v1063_v58 }
 0x1c5   :  { %v1076_v62 = vrot.slane %v1075_v32, 1 }
 0x1c6   :  { %v1069_v51 = vrot.slane %v1068_v53, 1  ;;  %v1168_v60 = vmul.f32 %v1254_v10, %v1056_v46  ;;  %v1173_v44 = vadd.f32 %v1169_v38, %v1160_v43  ;;  %v1106_v61 = vmul.f32 %v1250_v57, %v1056_v46 }
 0x1c7   :  { %v1077_v47 = vmax.f32 %v1075_v32, %v1076_v62  ;;  %v1111_v63 = vadd.f32 %v1107_v24, %v1098_v8 }
 0x1c8   :  { %v1070_v48 = vmax.f32 %v1068_v53, %v1069_v51  ;;  %v1172_v0 = vadd.f32 %v1168_v60, %v1159_v7  ;;  %v1180_v13 = vrot.slane %v1173_v44, 7  ;;  %v1110_v39 = vadd.f32 %v1106_v61, %v1097_v19 }
 0x1c9   :  { %v1171_v55 = vmul.f32 %v1254_v10, %v1077_v47  ;;  %v1109_v6 = vmul.f32 %v1250_v57, %v1077_v47  ;;  %v1118_v59 = vrot.slane %v1111_v63, 7 }
 0x1ca   :  { %v1170_v2 = vmul.f32 %v1254_v10, %v1070_v48  ;;  %v1181_v11 = vsel %vm1119_vm14, %v1180_v13, %v1172_v0  ;;  %v1108_v49 = vmul.f32 %v1250_v57, %v1070_v48 }
 0x1cb   :  { %v1175_v14 = vadd.f32 %v1171_v55, %v1162_v40  ;;  %v1113_v45 = vadd.f32 %v1109_v6, %v1100_v15  ;;  %v1120_v20 = vsel %vm1119_vm14, %v1118_v59, %v1110_v39 }
 0x1cc   :  { %v1174_v4 = vadd.f32 %v1170_v2, %v1161_v1  ;;  %v1112_v21 = vadd.f32 %v1108_v49, %v1099_v35  ;;  %v1251_v1 = vld [vmem:[%s2078_s3] ss:$0 sm:$0xff] }
 0x1cd   :  { %v1184_v22 = vrot.slane %v1175_v14, 5  ;;  %v1124_v7 = vrot.slane %v1113_v45, 5 }
 0x1ce   :  { %v1182_v16 = vrot.slane %v1174_v4, 6  ;;  %v1121_v26 = vrot.slane %v1112_v21, 6 }
 0x1d0   :  { %v1183_v25 = vsel %vm1122_vm15, %v1182_v16, %v1181_v11  ;;  %v1123_v43 = vsel %vm1122_vm15, %v1121_v26, %v1120_v20 }
 0x1d1   :  { %v1185_v27 = vsel %vm1125_vm0, %v1184_v22, %v1183_v25  ;;  %v1126_v3 = vsel %vm1125_vm0, %v1124_v7, %v1123_v43 }
 0x1d2   :  { %v1187_v30 = vsel %vm1128_vm1, %v1185_v27, 0.0  ;;  %v1129_v31 = vsel %vm1128_vm1, %v1126_v3, 0.0 }
 0x1d3   :  { %1188 = vadd.xlane.f32.xlu1 %v1187_v30  ;;  %1130 = vadd.xlane.f32.xlu0 %v1129_v31 }
 0x260   :  { %v1189_v33 = vpop.xlane.xlu1 %1188  ;;  %v1131_v34 = vpop.xlane.xlu0 %1130 }
 0x261   :  { %v1133_v36 = vsel %vm1132_vm2, %v1131_v34, 0.0  ;;  %v1191_v37 = vsel %vm1190_vm3, %v1189_v33, 0.0 }
 0x262   :  { %v1140_v23 = vadd.f32 %v1251_v1, %v1133_v36 }
 0x264   :  { %v1192_v40 = vadd.f32 %v1191_v37, %v1140_v23 }
 0x266   :  { %1194 = vst.msk [vmem:[%s2079_s4] sm:$0xf] %vm1193_vm4, %v1192_v40 }
 0x267   :  { %1199 = vsyncpa [#allocation3], 1 }

</bundles_post_ra>
